<compile_context>
chip_gen: v7x
topology: tpu7x:2x2x1
jax: 0.10.0
libtpu: 0.0.40
codegen_flags: <defaults>
</compile_context>

<pallas_src>
import functools
import math

import jax
import jax.numpy as jnp
from jax.experimental import pallas as pl
from jax.experimental.pallas import tpu as pltpu


LANE = 128  # TPU lane width


def _round_up(x, m):
    return (x + m - 1) // m * m


# ---------------------------------------------------------------------------
# Pallas kernel: fused 3x3 conv (padding=1) + bias + tanh for one image /
# one 128-wide Cout tile.
#   x_ref     : (H, W, Cin)        bf16  (unpadded NHWC image)
#   w_ref     : (9*Cin, 128)       bf16  (flattened HWIO weight tile)
#   b_ref     : (1, 128)           f32
#   o_ref     : (H*W, 128)         f32
#   patch_ref : (H, W, 9*Cin)      bf16  VMEM scratch (in-kernel im2col)
# ---------------------------------------------------------------------------
def conv3x3_tanh_kernel(x_ref, w_ref, b_ref, o_ref, patch_ref):
    h, w, cin = x_ref.shape

    # Build the im2col patch once per image; reuse it for every Cout tile.
    @pl.when(pl.program_id(1) == 0)
    def _build_patch():
        # Zeros on the untouched border strips implement padding=1.
        patch_ref[...] = jnp.zeros_like(patch_ref)
        for dy in range(3):
            for dx in range(3):
                oy, ox = dy - 1, dx - 1
                y0, y1 = max(0, -oy), h - max(0, oy)
                x0, x1 = max(0, -ox), w - max(0, ox)
                k = dy * 3 + dx
                patch_ref[y0:y1, x0:x1, k * cin:(k + 1) * cin] = (
                    x_ref[y0 + oy:y1 + oy, x0 + ox:x1 + ox, :])

    # Single big matmul: (H*W, 9*Cin) @ (9*Cin, 128) -> f32 accumulator.
    patch = patch_ref[...].reshape(h * w, 9 * cin)
    acc = jnp.dot(patch, w_ref[...], preferred_element_type=jnp.float32)

    # Bias + tanh in f32; lane-dense (multiple-of-128) store.
    o_ref[...] = jnp.tanh(acc + b_ref[...])


# ---------------------------------------------------------------------------
# Parameter construction / one-time weight re-layout (hoisted out of forward).
# ---------------------------------------------------------------------------
def init_headtanh2d_params(key, in_channels, out_channels):
    """Same init as nn.Conv2d: U(-1/sqrt(fan_in), 1/sqrt(fan_in))."""
    k1, k2 = jax.random.split(key)
    bound = 1.0 / math.sqrt(in_channels * 3 * 3)
    w = jax.random.uniform(k1, (out_channels, in_channels, 3, 3),
                           jnp.float32, -bound, bound)
    b = jax.random.uniform(k2, (out_channels,), jnp.float32, -bound, bound)
    return {"w": w, "b": b}


def prepare_params(params):
    """(Cout, Cin, 3, 3) f32 -> (9*Cin, Cout_pad) bf16; bias -> (1, Cout_pad) f32."""
    w, b = params["w"], params["b"]
    cout, cin = w.shape[0], w.shape[1]
    cout_pad = _round_up(cout, LANE)
    w_hwio = jnp.transpose(w, (2, 3, 1, 0))                       # (3,3,Cin,Cout)
    w_hwio = jnp.pad(w_hwio, ((0, 0), (0, 0), (0, 0), (0, cout_pad - cout)))
    w_mat = w_hwio.reshape(9 * cin, cout_pad).astype(jnp.bfloat16)
    b_pad = jnp.pad(b, (0, cout_pad - cout)).reshape(1, cout_pad).astype(jnp.float32)
    return w_mat, b_pad


# ---------------------------------------------------------------------------
# Forward wrapper (NCHW in / NCHW out, matching the PyTorch module).
# ---------------------------------------------------------------------------
def headtanh2d_pallas(x_nchw, w_mat_bf16, b_pad_f32, out_channels):
    n, cin, h, w = x_nchw.shape
    cout_pad = w_mat_bf16.shape[-1]
    assert w_mat_bf16.shape[0] == 9 * cin
    assert cout_pad % LANE == 0
    tc = LANE
    n_ct = cout_pad // tc

    # NHWC + bf16 feeds the MXU and halves input DMA.  No spatial padding in
    # HBM: padding=1 is handled inside the kernel via the zeroed patch scratch.
    x = jnp.transpose(x_nchw, (0, 2, 3, 1)).astype(jnp.bfloat16)  # (N, H, W, Cin)

    flops = 2 * n * h * w * 9 * cin * cout_pad
    bytes_accessed = (x.size * 2 + w_mat_bf16.size * 2
                      + b_pad_f32.size * 4 + n * h * w * cout_pad * 4)
    cost = pl.CostEstimate(flops=flops,
                           transcendentals=n * h * w * cout_pad,
                           bytes_accessed=bytes_accessed)

    out = pl.pallas_call(
        conv3x3_tanh_kernel,
        out_shape=jax.ShapeDtypeStruct((n, h * w, cout_pad), jnp.float32),
        grid_spec=pltpu.PrefetchScalarGridSpec(
            num_scalar_prefetch=0,
            grid=(n, n_ct),
            in_specs=[
                # Whole (unpadded) image per grid step (squeezed batch dim).
                # Block index is constant in jc -> Pallas skips the re-DMA.
                pl.BlockSpec((None, h, w, cin), lambda nb, jc: (nb, 0, 0, 0)),
                # One 128-wide Cout tile of the flattened weights.
                pl.BlockSpec((9 * cin, tc), lambda nb, jc: (0, jc)),
                pl.BlockSpec((1, tc), lambda nb, jc: (0, jc)),
            ],
            out_specs=pl.BlockSpec((None, h * w, tc),
                                   lambda nb, jc: (nb, 0, jc)),
            scratch_shapes=[pltpu.VMEM((h, w, 9 * cin), jnp.bfloat16)],
        ),
        compiler_params=pltpu.CompilerParams(
            # batch axis parallel (megacore); Cout axis arbitrary so the
            # per-image patch build at jc==0 is always seen by each core.
            dimension_semantics=("parallel", "arbitrary"),
            vmem_limit_bytes=32 * 1024 * 1024,
        ),
        cost_estimate=cost,
    )(x, w_mat_bf16, b_pad_f32)

    out = out.reshape(n, h, w, cout_pad)[..., :out_channels]      # drop lane pad
    return jnp.transpose(out, (0, 3, 1, 2))                       # NCHW, f32


# ---------------------------------------------------------------------------
# Pure-JAX reference for correctness checking.
# ---------------------------------------------------------------------------
def headtanh2d_reference(x_nchw, w_oihw, b):
    y = jax.lax.conv_general_dilated(
        x_nchw, w_oihw, window_strides=(1, 1), padding=((1, 1), (1, 1)),
        dimension_numbers=("NCHW", "OIHW", "NCHW"))
    return jnp.tanh(y + b.reshape(1, -1, 1, 1))


# ---------------------------------------------------------------------------
if __name__ == "__main__":
    key = jax.random.PRNGKey(0)
    kx, kp = jax.random.split(key)

    # Small shapes; Cout=192 exercises both the lane-padding path (192 -> 256)
    # and the multi-Cout-tile patch-reuse path (2 tiles of 128).
    N, CIN, COUT, H, W = 2, 16, 192, 16, 16

    params = init_headtanh2d_params(kp, CIN, COUT)
    w_mat, b_pad = prepare_params(params)           # one-time re-layout (hoisted)

    x = jax.random.normal(kx, (N, CIN, H, W), jnp.float32)

    fwd = jax.jit(headtanh2d_pallas, static_argnums=(3,))
    y = jax.block_until_ready(fwd(x, w_mat, b_pad, COUT))

    assert y.shape == (N, COUT, H, W), y.shape
    assert bool(jnp.all(jnp.isfinite(y)))

    y_ref = headtanh2d_reference(x, params["w"], params["b"])
    max_err = float(jnp.max(jnp.abs(y - y_ref)))
    assert max_err < 5e-2, f"max abs error vs reference: {max_err}"

    print("KERNEL_OK")
</pallas_src>

<mosaic_0001>
module attributes {stable_mosaic.version = 11 : i64} {
  func.func @conv3x3_tanh_kernel(%arg0: i32, %arg1: i32, %arg2: memref<1x16x16x16xbf16, #tpu.memory_space<vmem>>, %arg3: memref<144x128xbf16, #tpu.memory_space<vmem>>, %arg4: memref<1x128xf32, #tpu.memory_space<vmem>>, %arg5: memref<1x256x128xf32, #tpu.memory_space<vmem>>, %arg6: memref<16x16x144xbf16, #tpu.memory_space<vmem>>) attributes {dimension_semantics = [#tpu.dimension_semantics<parallel>, #tpu.dimension_semantics<arbitrary>], iteration_bounds = array<i64: 2, 2>, scalar_prefetch = 0 : i64, scratch_operands = 1 : i64, tpu.core_type = #tpu.core_type<tc>, window_params = [{transform_indices = @transform_0, window_bounds = array<i64: 1, 16, 16, 16>}, {transform_indices = @transform_1, window_bounds = array<i64: 144, 128>}, {transform_indices = @transform_2, window_bounds = array<i64: 1, 128>}, {transform_indices = @transform_3, window_bounds = array<i64: 1, 256, 128>}]} {
    %c0_i32 = arith.constant 0 : i32
    %0 = arith.cmpi eq, %arg1, %c0_i32 : i32
    %1 = arith.extui %0 : i1 to i32
    %c0_i32_0 = arith.constant 0 : i32
    %2 = arith.cmpi ne, %1, %c0_i32_0 : i32
    scf.if %2 {
      %cst_10 = arith.constant 0.000000e+00 : bf16
      %14 = vector.broadcast %cst_10 : bf16 to vector<16x16x144xbf16>
      %c0_11 = arith.constant 0 : index
      %c0_12 = arith.constant 0 : index
      %c0_13 = arith.constant 0 : index
      %15 = vector.load %arg6[%c0_11, %c0_12, %c0_13] : memref<16x16x144xbf16, #tpu.memory_space<vmem>>, vector<16x16x144xbf16>
      tpu.vector_store %arg6[%c0_11, %c0_12, %c0_13], %14 {strides = array<i32>} : memref<16x16x144xbf16, #tpu.memory_space<vmem>>, vector<16x16x144xbf16>,
      %c0_14 = arith.constant 0 : index
      %c0_15 = arith.constant 0 : index
      %c0_16 = arith.constant 0 : index
      %c0_17 = arith.constant 0 : index
      %16 = vector.load %arg2[%c0_14, %c0_15, %c0_16, %c0_17] : memref<1x16x16x16xbf16, #tpu.memory_space<vmem>>, vector<1x15x15x16xbf16>
      %17 = vector.shape_cast %16 : vector<1x15x15x16xbf16> to vector<15x15x16xbf16>
      %c1 = arith.constant 1 : index
      %c1_18 = arith.constant 1 : index
      %c0_19 = arith.constant 0 : index
      %18 = vector.load %arg6[%c1, %c1_18, %c0_19] : memref<16x16x144xbf16, #tpu.memory_space<vmem>>, vector<15x15x16xbf16>
      tpu.vector_store %arg6[%c1, %c1_18, %c0_19], %17 {strides = array<i32>} : memref<16x16x144xbf16, #tpu.memory_space<vmem>>, vector<15x15x16xbf16>,
      %c0_20 = arith.constant 0 : index
      %c0_21 = arith.constant 0 : index
      %c0_22 = arith.constant 0 : index
      %c0_23 = arith.constant 0 : index
      %19 = vector.load %arg2[%c0_20, %c0_21, %c0_22, %c0_23] : memref<1x16x16x16xbf16, #tpu.memory_space<vmem>>, vector<1x15x16x16xbf16>
      %20 = vector.shape_cast %19 : vector<1x15x16x16xbf16> to vector<15x16x16xbf16>
      %c1_24 = arith.constant 1 : index
      %c0_25 = arith.constant 0 : index
      %c16 = arith.constant 16 : index
      %21 = vector.load %arg6[%c1_24, %c0_25, %c16] : memref<16x16x144xbf16, #tpu.memory_space<vmem>>, vector<15x16x16xbf16>
      tpu.vector_store %arg6[%c1_24, %c0_25, %c16], %20 {strides = array<i32>} : memref<16x16x144xbf16, #tpu.memory_space<vmem>>, vector<15x16x16xbf16>,
      %c0_26 = arith.constant 0 : index
      %c0_27 = arith.constant 0 : index
      %c1_28 = arith.constant 1 : index
      %c0_29 = arith.constant 0 : index
      %22 = vector.load %arg2[%c0_26, %c0_27, %c1_28, %c0_29] : memref<1x16x16x16xbf16, #tpu.memory_space<vmem>>, vector<1x15x15x16xbf16>
      %23 = vector.shape_cast %22 : vector<1x15x15x16xbf16> to vector<15x15x16xbf16>
      %c1_30 = arith.constant 1 : index
      %c0_31 = arith.constant 0 : index
      %c32 = arith.constant 32 : index
      %24 = vector.load %arg6[%c1_30, %c0_31, %c32] : memref<16x16x144xbf16, #tpu.memory_space<vmem>>, vector<15x15x16xbf16>
      tpu.vector_store %arg6[%c1_30, %c0_31, %c32], %23 {strides = array<i32>} : memref<16x16x144xbf16, #tpu.memory_space<vmem>>, vector<15x15x16xbf16>,
      %c0_32 = arith.constant 0 : index
      %c0_33 = arith.constant 0 : index
      %c0_34 = arith.constant 0 : index
      %c0_35 = arith.constant 0 : index
      %25 = vector.load %arg2[%c0_32, %c0_33, %c0_34, %c0_35] : memref<1x16x16x16xbf16, #tpu.memory_space<vmem>>, vector<1x16x15x16xbf16>
      %26 = vector.shape_cast %25 : vector<1x16x15x16xbf16> to vector<16x15x16xbf16>
      %c0_36 = arith.constant 0 : index
      %c1_37 = arith.constant 1 : index
      %c48 = arith.constant 48 : index
      %27 = vector.load %arg6[%c0_36, %c1_37, %c48] : memref<16x16x144xbf16, #tpu.memory_space<vmem>>, vector<16x15x16xbf16>
      tpu.vector_store %arg6[%c0_36, %c1_37, %c48], %26 {strides = array<i32>} : memref<16x16x144xbf16, #tpu.memory_space<vmem>>, vector<16x15x16xbf16>,
      %c0_38 = arith.constant 0 : index
      %c0_39 = arith.constant 0 : index
      %c0_40 = arith.constant 0 : index
      %c0_41 = arith.constant 0 : index
      %28 = vector.load %arg2[%c0_38, %c0_39, %c0_40, %c0_41] : memref<1x16x16x16xbf16, #tpu.memory_space<vmem>>, vector<1x16x16x16xbf16>
      %29 = vector.shape_cast %28 : vector<1x16x16x16xbf16> to vector<16x16x16xbf16>
      %c0_42 = arith.constant 0 : index
      %c0_43 = arith.constant 0 : index
      %c64 = arith.constant 64 : index
      %30 = vector.load %arg6[%c0_42, %c0_43, %c64] : memref<16x16x144xbf16, #tpu.memory_space<vmem>>, vector<16x16x16xbf16>
      tpu.vector_store %arg6[%c0_42, %c0_43, %c64], %29 {strides = array<i32>} : memref<16x16x144xbf16, #tpu.memory_space<vmem>>, vector<16x16x16xbf16>,
      %c0_44 = arith.constant 0 : index
      %c0_45 = arith.constant 0 : index
      %c1_46 = arith.constant 1 : index
      %c0_47 = arith.constant 0 : index
      %31 = vector.load %arg2[%c0_44, %c0_45, %c1_46, %c0_47] : memref<1x16x16x16xbf16, #tpu.memory_space<vmem>>, vector<1x16x15x16xbf16>
      %32 = vector.shape_cast %31 : vector<1x16x15x16xbf16> to vector<16x15x16xbf16>
      %c0_48 = arith.constant 0 : index
      %c0_49 = arith.constant 0 : index
      %c80 = arith.constant 80 : index
      %33 = vector.load %arg6[%c0_48, %c0_49, %c80] : memref<16x16x144xbf16, #tpu.memory_space<vmem>>, vector<16x15x16xbf16>
      tpu.vector_store %arg6[%c0_48, %c0_49, %c80], %32 {strides = array<i32>} : memref<16x16x144xbf16, #tpu.memory_space<vmem>>, vector<16x15x16xbf16>,
      %c0_50 = arith.constant 0 : index
      %c1_51 = arith.constant 1 : index
      %c0_52 = arith.constant 0 : index
      %c0_53 = arith.constant 0 : index
      %34 = vector.load %arg2[%c0_50, %c1_51, %c0_52, %c0_53] : memref<1x16x16x16xbf16, #tpu.memory_space<vmem>>, vector<1x15x15x16xbf16>
      %35 = vector.shape_cast %34 : vector<1x15x15x16xbf16> to vector<15x15x16xbf16>
      %c0_54 = arith.constant 0 : index
      %c1_55 = arith.constant 1 : index
      %c96 = arith.constant 96 : index
      %36 = vector.load %arg6[%c0_54, %c1_55, %c96] : memref<16x16x144xbf16, #tpu.memory_space<vmem>>, vector<15x15x16xbf16>
      tpu.vector_store %arg6[%c0_54, %c1_55, %c96], %35 {strides = array<i32>} : memref<16x16x144xbf16, #tpu.memory_space<vmem>>, vector<15x15x16xbf16>,
      %c0_56 = arith.constant 0 : index
      %c1_57 = arith.constant 1 : index
      %c0_58 = arith.constant 0 : index
      %c0_59 = arith.constant 0 : index
      %37 = vector.load %arg2[%c0_56, %c1_57, %c0_58, %c0_59] : memref<1x16x16x16xbf16, #tpu.memory_space<vmem>>, vector<1x15x16x16xbf16>
      %38 = vector.shape_cast %37 : vector<1x15x16x16xbf16> to vector<15x16x16xbf16>
      %c0_60 = arith.constant 0 : index
      %c0_61 = arith.constant 0 : index
      %c112 = arith.constant 112 : index
      %39 = vector.load %arg6[%c0_60, %c0_61, %c112] : memref<16x16x144xbf16, #tpu.memory_space<vmem>>, vector<15x16x16xbf16>
      tpu.vector_store %arg6[%c0_60, %c0_61, %c112], %38 {strides = array<i32>} : memref<16x16x144xbf16, #tpu.memory_space<vmem>>, vector<15x16x16xbf16>,
      %c0_62 = arith.constant 0 : index
      %c1_63 = arith.constant 1 : index
      %c1_64 = arith.constant 1 : index
      %c0_65 = arith.constant 0 : index
      %40 = vector.load %arg2[%c0_62, %c1_63, %c1_64, %c0_65] : memref<1x16x16x16xbf16, #tpu.memory_space<vmem>>, vector<1x15x15x16xbf16>
      %41 = vector.shape_cast %40 : vector<1x15x15x16xbf16> to vector<15x15x16xbf16>
      %c0_66 = arith.constant 0 : index
      %c0_67 = arith.constant 0 : index
      %c128 = arith.constant 128 : index
      %42 = vector.load %arg6[%c0_66, %c0_67, %c128] : memref<16x16x144xbf16, #tpu.memory_space<vmem>>, vector<15x15x16xbf16>
      tpu.vector_store %arg6[%c0_66, %c0_67, %c128], %41 {strides = array<i32>} : memref<16x16x144xbf16, #tpu.memory_space<vmem>>, vector<15x15x16xbf16>,
    } else {
    }
    %c0 = arith.constant 0 : index
    %c0_1 = arith.constant 0 : index
    %c0_2 = arith.constant 0 : index
    %3 = vector.load %arg6[%c0, %c0_1, %c0_2] : memref<16x16x144xbf16, #tpu.memory_space<vmem>>, vector<16x16x144xbf16>
    %4 = vector.shape_cast %3 : vector<16x16x144xbf16> to vector<256x144xbf16>
    %c0_3 = arith.constant 0 : index
    %c0_4 = arith.constant 0 : index
    %5 = vector.load %arg3[%c0_3, %c0_4] : memref<144x128xbf16, #tpu.memory_space<vmem>>, vector<144x128xbf16>
    %cst = arith.constant dense<0.000000e+00> : vector<256x128xf32>
    %6 = tpu.matmul %4, %5, %cst {dimension_numbers = #tpu.dot_dimension_numbers<[1], [0], [0], [1], [0, 0, 1, 1], [], []>} : vector<256x144xbf16>, vector<144x128xbf16>, vector<256x128xf32> -> vector<256x128xf32>
    %c0_5 = arith.constant 0 : index
    %c0_6 = arith.constant 0 : index
    %7 = vector.load %arg4[%c0_5, %c0_6] : memref<1x128xf32, #tpu.memory_space<vmem>>, vector<1x128xf32>
    %8 = vector.broadcast %7 : vector<1x128xf32> to vector<256x128xf32>
    %9 = arith.addf %6, %8 : vector<256x128xf32>
    %10 = math.tanh %9 : vector<256x128xf32>
    %c0_7 = arith.constant 0 : index
    %c0_8 = arith.constant 0 : index
    %c0_9 = arith.constant 0 : index
    %11 = vector.load %arg5[%c0_7, %c0_8, %c0_9] : memref<1x256x128xf32, #tpu.memory_space<vmem>>, vector<1x256x128xf32>
    %12 = vector.shape_cast %11 : vector<1x256x128xf32> to vector<256x128xf32>
    %13 = vector.shape_cast %10 : vector<256x128xf32> to vector<1x256x128xf32>
    tpu.vector_store %arg5[%c0_7, %c0_8, %c0_9], %13 {strides = array<i32>} : memref<1x256x128xf32, #tpu.memory_space<vmem>>, vector<1x256x128xf32>,
    return
  }
  func.func @transform_0(%arg0: i32, %arg1: i32) -> (i32, i32, i32, i32) {
    %c0_i32 = arith.constant 0 : i32
    %c0_i32_0 = arith.constant 0 : i32
    %c0_i32_1 = arith.constant 0 : i32
    %c0_i32_2 = arith.constant 0 : i32
    return %arg0, %c0_i32, %c0_i32_0, %c0_i32_1 : i32, i32, i32, i32
  }
  func.func @transform_1(%arg0: i32, %arg1: i32) -> (i32, i32) {
    %c0_i32 = arith.constant 0 : i32
    %c0_i32_0 = arith.constant 0 : i32
    return %c0_i32, %arg1 : i32, i32
  }
  func.func @transform_2(%arg0: i32, %arg1: i32) -> (i32, i32) {
    %c0_i32 = arith.constant 0 : i32
    %c0_i32_0 = arith.constant 0 : i32
    return %c0_i32, %arg1 : i32, i32
  }
  func.func @transform_3(%arg0: i32, %arg1: i32) -> (i32, i32, i32) {
    %c0_i32 = arith.constant 0 : i32
    %c0_i32_0 = arith.constant 0 : i32
    return %arg0, %c0_i32, %arg1 : i32, i32, i32
  }
}

</mosaic_0001>

<bundles_post_ra>
// kernel: headtanh2d_pallas.1
= control target key start
LH: loop header
LB: loop body
LE: loop exit
PB: predicated region body
PF: predicated region fallthrough
CT: control target
= control target key end

     0   :  { %s3990_s12 = smov 0   ;;  %s3992_s13 = smov 0   ;;  %s5269_s0 = inlined_call_operand.vmem [shape: bf16[2,16,16,16], index: 0, kind: input, shape index: {}]   ;;  %s5270_s1 = inlined_call_operand.vmem [shape: bf16[144,256], index: 1, kind: input, shape index: {}]   ;;  %s5271_s2 = inlined_call_operand.vmem [shape: f32[1,256], index: 2, kind: input, shape index: {}]   ;;  %s5272_s3 = inlined_call_operand.vmem [shape: f32[2,256,256], index: 3, kind: output, shape index: {}]  }
   0x1   :  { %s3994_s14 = smov 0   ;;  %s3996_s15 = smov 0  }
   0x2   :  { %s3998_s16 = smov 0   ;;  %s4000_s17 = smov 0  }
   0x3   :  { %s4002_s18 = smov 0   ;;  %s4004_s19 = smov 0  }
   0x4   :  { %s4006_s20 = smov 0  }
   0x5 LB: > { %s3307_s21 = sadd.s32 4294967295, %s3959_s20   ;;  %s22_s22 = sadd.s32 1, %s3951_s18  ;;  %s3959_s20 = sphi %s4006_s20, %s13_s20   ;;  %s3955_s19 = sphi %s4004_s19, %s5293_s19   ;;  %s3951_s18 = sphi %s4002_s18, %s5292_s18   ;;  %s3947_s17 = sphi %s4000_s17, %s5291_s17   ;;  %s3943_s16 = sphi %s3998_s16, %s5290_s16   ;;  %s3939_s15 = sphi %s3996_s15, %s5289_s15   ;;  %s3935_s14 = sphi %s3994_s14, %s5288_s14   ;;  %s3931_s13 = sphi %s3992_s13, %s5287_s13   ;;  %s3927_s12 = sphi %s3990_s12, %s5286_s12  }
   0x6   : > { %p23_p0 = scmp.ge.s32.totalorder %s22_s22, 2  ;;  %s25_s23 = sadd.s32 1, %s3955_s19 }
   0x7   : > { %s58_s24 = sadd.s32 1, %s3939_s15  ;;  %p65_p1 = scmp.ne.s32.totalorder %s3939_s15, %s3935_s14 }
   0x8   : > { %s5295_s22 = smov (%p23_p0, %s22_s22), 0  ;;  %s5297_s23 = smov (!%p23_p0, %s25_s23), %s3955_s19 }
   0x9   : > { %s55_s25 = ssub.s32 %s3951_s18, %s5295_s22  ;;  %p66_p2 = scmp.eq.s32.totalorder %s3959_s20, 0 }
   0xa   : > { %p27_p3 = scmp.ge.s32.totalorder %s5297_s23, 2  ;;  %p56_p4 = scmp.eq.s32.totalorder %s55_s25, 0 }
   0xb   : > { %p67_p5 = por %p66_p2, %p65_p1  ;;  %s112_s26 = sadd.s32 1, %s3931_s13 }
   0xc   : > { %s5299_s23 = smov (%p27_p3, %s5297_s23), 0  ;;  %p122_p6 = scmp.ne.s32.totalorder %s3931_s13, %s3927_s12 }
   0xd   : > { %s4051_s27 = scalar_select %p56_p4, %s3939_s15, %s58_s24  }
   0xe   : > { %s107_s28 = ssub.s32 %s3955_s19, %s5299_s23  ;;  %p123_p7 = scmp.eq.s32.totalorder %s3307_s21, 3 }
   0xf   : > { %s109_s29 = sor.u32 %s107_s28, %s55_s25  ;;  %p3310_p10 = scmp.ge.s32.totalorder %s3959_s20, 4 }
  0x10   : > { %p110_p8 = scmp.eq.s32.totalorder %s109_s29, 0  ;;  %p4057_p9 = por %p123_p7, %p122_p6 }
  0x11   : > { %145 = sbr.rel (%p3310_p10) target bundleno = 40 (0x28), region = 16 }
  0x12   : > { %s4062_s4 = scalar_select %p110_p8, %s3931_s13, %s112_s26  }
  0x18   : > { %156 = sbr.rel (!%p67_p5) target bundleno = 40 (0x28), region = 24  ;;  %s158_s5 = sand.u32 (%p67_p5), 1, %s3939_s15  }
  0x19   : > { %s3311_s6 = sshll.u32 (%p67_p5), %s3951_s18, 2  ;;  %s3595_s7 = smul.u32 (%p67_p5), 72, %s158_s5 }
  0x1a   : > { %s4070_s10 = scalar_lea.vmem (%p67_p5), %s5270_s1, %s3311_s6 }
  0x1b   : > { %v178_v0 = vld [vmem:[%s4070_s10] sm:$0xf] (%p67_p5)  ;;  %v180_v1 = vld [vmem:[%s4070_s10 + $0x8] sm:$0xf] (%p67_p5)  ;;  %v182_v2 = vld [vmem:[%s4070_s10 + $0x10] sm:$0xf] (%p67_p5) }
  0x1c   : > { %v184_v3 = vld [vmem:[%s4070_s10 + $0x18] sm:$0xf] (%p67_p5)  ;;  %v186_v4 = vld [vmem:[%s4070_s10 + $0x20] sm:$0xf] (%p67_p5)  ;;  %s4077_s11 = scalar_lea.vmem (%p67_p5), [#allocation3], %s3595_s7 }
  0x1d   : > { %179 = vst [vmem:[%s4077_s11] sm:$0xf] (%p67_p5), %v178_v0  ;;  %181 = vst [vmem:[%s4077_s11 + $0x4] sm:$0xf] (%p67_p5), %v180_v1  ;;  %v188_v5 = vld [vmem:[%s4070_s10 + $0x28] sm:$0xf] (%p67_p5) }
  0x1e   : > { %183 = vst [vmem:[%s4077_s11 + $0x8] sm:$0xf] (%p67_p5), %v182_v2  ;;  %185 = vst [vmem:[%s4077_s11 + $0xc] sm:$0xf] (%p67_p5), %v184_v3  ;;  %v190_v6 = vld [vmem:[%s4070_s10 + $0x30] sm:$0xf] (%p67_p5) }
  0x1f   : > { %187 = vst [vmem:[%s4077_s11 + $0x10] sm:$0xf] %v186_v4  ;;  %v192_v7 = vld [vmem:[%s4070_s10 + $0x38] sm:$0xf]  ;;  %189 = vst [vmem:[%s4077_s11 + $0x14] sm:$0xf] %v188_v5 }
  0x20   : > { %191 = vst [vmem:[%s4077_s11 + $0x18] sm:$0xf] %v190_v6  ;;  %193 = vst [vmem:[%s4077_s11 + $0x1c] sm:$0xf] %v192_v7  ;;  %v194_v8 = vld [vmem:[%s4070_s10 + $0x40] sm:$0xf] }
  0x21   : > { %v196_v9 = vld [vmem:[%s4070_s10 + $0x48] sm:$0xf]  ;;  %v198_v10 = vld [vmem:[%s4070_s10 + $0x50] sm:$0xf]  ;;  %195 = vst [vmem:[%s4077_s11 + $0x20] sm:$0xf] %v194_v8 }
  0x22   : > { %197 = vst [vmem:[%s4077_s11 + $0x24] sm:$0xf] %v196_v9  ;;  %199 = vst [vmem:[%s4077_s11 + $0x28] sm:$0xf] %v198_v10  ;;  %v200_v11 = vld [vmem:[%s4070_s10 + $0x58] sm:$0xf] }
  0x23   : > { %v202_v12 = vld [vmem:[%s4070_s10 + $0x60] sm:$0xf]  ;;  %v204_v13 = vld [vmem:[%s4070_s10 + $0x68] sm:$0xf]  ;;  %201 = vst [vmem:[%s4077_s11 + $0x2c] sm:$0xf] %v200_v11 }
  0x24   : > { %203 = vst [vmem:[%s4077_s11 + $0x30] sm:$0xf] %v202_v12  ;;  %205 = vst [vmem:[%s4077_s11 + $0x34] sm:$0xf] %v204_v13  ;;  %v206_v14 = vld [vmem:[%s4070_s10 + $0x70] sm:$0xf] }
  0x25   : > { %v208_v15 = vld [vmem:[%s4070_s10 + $0x78] sm:$0xf]  ;;  %v210_v16 = vld [vmem:[%s4070_s10 + $0x80] sm:$0xf]  ;;  %207 = vst [vmem:[%s4077_s11 + $0x38] sm:$0xf] %v206_v14 }
  0x26   : > { %209 = vst [vmem:[%s4077_s11 + $0x3c] sm:$0xf] %v208_v15  ;;  %211 = vst [vmem:[%s4077_s11 + $0x40] sm:$0xf] %v210_v16  ;;  %v212_v17 = vld [vmem:[%s4070_s10 + $0x88] sm:$0xf] }
  0x27   : > { %213 = vst [vmem:[%s4077_s11 + $0x44] sm:$0xf] %v212_v17 }
  0x28 PF: > { %p3312_p11 = scmp.ge.s32.totalorder %s3959_s20, 1  ;;  %p277_p12 = scmp.lt.s32.totalorder %s3959_s20, 5 }
  0x2a   : > { %p278_p13 = pnand %p3312_p11, %p277_p12 }
  0x2b   : > { %s284_s21 = sand.u32 (!%p278_p13), 1, %s3935_s14   ;;  %s311_s24 = sand.u32 (!%p278_p13), 1, %s3927_s12  }
  0x2c   : > { %281 = sbr.rel (%p278_p13) target bundleno = 714 (0x2ca), region = 69  ;;  %s3313_s26 = sshll.u32 (!%p278_p13), %s311_s24, 8 }
  0x2d   : > { %s3596_s25 = smul.u32 (!%p278_p13), 72, %s284_s21  ;;  %p314_p0 = scmp.lt.s32.totalorder (!%p278_p13), %s3947_s17, 1 }
  0x2e   : > { %p319_p1 = scmp.lt.s32.totalorder (!%p278_p13), %s3943_s16, 1  ;;  %s4131_s12 = scalar_lea.vmem (!%p278_p13), [#allocation4], %s3313_s26 }
  0x2f   : > { %s4129_s14 = scalar_lea.vmem (!%p278_p13), [#allocation3], %s3596_s25  ;;  %p3316_p2 = scmp.ne.s32.totalorder (!%p278_p13), %s3943_s16, 0 }
  0x33   : > { %s315_s28 = scalar_select %p314_p0, %s3947_s17, 1 }
  0x34   : > { %s4118_s29 = scalar_select %p319_p1, %s3943_s16, 1 }
  0x35   : > { %s3576_s5 = sshll.u32 %s315_s28, 7  ;;  %326 = sbr.rel (%p3316_p2) target bundleno = 384 (0x180), region = 77  ;;  %vm328_vm0 = vcmask (!%p3316_p2), 130048   ;;  %v3962_v24 = vmov (!%p3316_p2), 0   ;;  %vm587_vm1 = vsmask.f32 (!%p3316_p2), 7938 }
  0x36   : > { %s4123_s8 = scalar_lea.vmem %s5269_s0, %s3576_s5  ;;  %s321_s11 = scalar_lea.vmem %s5271_s2, %s4118_s29  ;;  %329 = vst.msk [vmem:[#allocation2 + $0x8] sm:$0xff] (!%p3316_p2), %vm328_vm0, %v3962_v24  ;;  %331 = vst.msk [vmem:[#allocation2 + $0x18] sm:$0xff] (!%p3316_p2), %vm328_vm0, %v3962_v24  ;;  %vm784_vm3 = vcmask (!%p3316_p2), 261248   ;;  %vm1055_vm4 = vcmask (!%p3316_p2), 392448   ;;  %vm1056_vm5 = vsmask.f32 (!%p3316_p2), 7424 }
  0x37   : > { %v3678_v18 = vld [vmem:[%s4123_s8 + $0x10] sm:$0xff] (!%p3316_p2)   ;;  %v3679_v19 = vld [vmem:[%s4123_s8] sm:$0xff] (!%p3316_p2)   ;;  %s3961_s21 = smov (!%p3316_p2), 16   ;;  %v3680_v20 = vld [vmem:[%s4123_s8 + $0x18] sm:$0xff] (!%p3316_p2)   ;;  %333 = vst.msk [vmem:[#allocation2 + $0x28] sm:$0xff] (!%p3316_p2), %vm328_vm0, %v3962_v24  ;;  %s3963_s24 = smov (!%p3316_p2), 32  }
  0x38   : > { %743 = vrot.lane.b32.xlu1 (!%p3316_p2), %v3678_v18, %s3961_s21  ;;  %739 = vrot.lane.b32.xlu0 (!%p3316_p2), %v3679_v19, %s3961_s21  ;;  %v3681_v21 = vld [vmem:[%s4123_s8 + $0x8] sm:$0xff] (!%p3316_p2)   ;;  %v3683_v23 = vld [vmem:[%s4123_s8 + $0x20] sm:$0xff] (!%p3316_p2)   ;;  %335 = vst.msk [vmem:[#allocation2 + $0x38] sm:$0xff] (!%p3316_p2), %vm328_vm0, %v3962_v24  ;;  %337 = vst.msk [vmem:[#allocation2 + $0x48] sm:$0xff] (!%p3316_p2), %vm328_vm0, %v3962_v24  ;;  %s3964_s25 = smov (!%p3316_p2), 48   ;;  %s3965_s26 = smov (!%p3316_p2), 64  }
  0x39   : > { %v3682_v22 = vld [vmem:[%s4123_s8 + $0x28] sm:$0xff] (!%p3316_p2)   ;;  %339 = vst.msk [vmem:[#allocation2 + $0x58] sm:$0xff] (!%p3316_p2), %vm328_vm0, %v3962_v24  ;;  %341 = vst.msk [vmem:[#allocation2 + $0x68] sm:$0xff] (!%p3316_p2), %vm328_vm0, %v3962_v24  ;;  %v3684_v25 = vld [vmem:[%s4123_s8 + $0x38] sm:$0xff] (!%p3316_p2)   ;;  %s3966_s28 = smov (!%p3316_p2), 80   ;;  %s3967_s5 = smov (!%p3316_p2), 96  }
  0x3a   : > { %343 = vst.msk [vmem:[#allocation2 + $0x78] sm:$0xff] (!%p3316_p2), %vm328_vm0, %v3962_v24  ;;  %345 = vst.msk [vmem:[#allocation2 + $0x88] sm:$0xff] (!%p3316_p2), %vm328_vm0, %v3962_v24  ;;  %v3685_v26 = vld [vmem:[%s4123_s8 + $0x30] sm:$0xff] (!%p3316_p2)   ;;  %v3686_v27 = vld [vmem:[%s4123_s8 + $0x48] sm:$0xff] (!%p3316_p2)   ;;  %vm1375_vm7 = vcmask (!%p3316_p2), 523648   ;;  %s3968_s6 = smov (!%p3316_p2), 112  }
  0x3b   : > { %347 = vst.msk [vmem:[#allocation2 + $0x98] sm:$0xff] (!%p3316_p2), %vm328_vm0, %v3962_v24  ;;  %349 = vst.msk [vmem:[#allocation2 + $0xa8] sm:$0xff] (!%p3316_p2), %vm328_vm0, %v3962_v24  ;;  %v3692_v28 = vld [vmem:[%s4123_s8] sm:$0xff] (!%p3316_p2)   ;;  %v3688_v30 = vld [vmem:[%s4123_s8 + $0x58] sm:$0xff] (!%p3316_p2)   ;;  %vm1585_vm10 = vcmask (!%p3316_p2), 654848   ;;  %vm1874_vm11 = vcmask (!%p3316_p2), 786048  }
  0x3c   : > { %745 = vrot.lane.b32.xlu1 %v3680_v20, %s3961_s21  ;;  %741 = vrot.lane.b32.xlu0 %v3681_v21, %s3961_s21  ;;  %351 = vst.msk [vmem:[#allocation2 + $0xb8] sm:$0xff] %vm328_vm0, %v3962_v24  ;;  %353 = vst.msk [vmem:[#allocation2 + $0xc8] sm:$0xff] %vm328_vm0, %v3962_v24  ;;  %v3687_v29 = vld [vmem:[%s4123_s8 + $0x40] sm:$0xff]   ;;  %v908_v31 = vshll.u32 %v3692_v28, 16  ;;  %v3694_v32 = vld [vmem:[%s4123_s8 + $0x10] sm:$0xff]   ;;  %v906_v37 = vshrl.u32 %v3692_v28, 16 }
  0x3d   : > { %355 = vst.msk [vmem:[#allocation2 + $0xd8] sm:$0xff] %vm328_vm0, %v3962_v24  ;;  %357 = vst.msk [vmem:[#allocation2 + $0xe8] sm:$0xff] %vm328_vm0, %v3962_v24  ;;  %v3689_v33 = vld [vmem:[%s4123_s8 + $0x50] sm:$0xff]   ;;  %v3695_v34 = vld [vmem:[%s4123_s8 + $0x8] sm:$0xff]   ;;  %v922_v39 = vshll.u32 %v3694_v32, 16  ;;  %v920_v44 = vshrl.u32 %v3694_v32, 16 }
  0x3e   : > { %359 = vst.msk [vmem:[#allocation2 + $0xf8] sm:$0xff] %vm328_vm0, %v3962_v24  ;;  %v3690_v35 = vld [vmem:[%s4123_s8 + $0x68] sm:$0xff]   ;;  %v3696_v36 = vld [vmem:[%s4123_s8 + $0x20] sm:$0xff]   ;;  %v910_v38 = vrot.slane %v908_v31, 1  ;;  %v3697_v40 = vld [vmem:[%s4123_s8 + $0x18] sm:$0xff]   ;;  %v915_v42 = vshll.u32 %v3695_v34, 16 }
  0x3f   : > { %v3691_v41 = vld [vmem:[%s4123_s8 + $0x60] sm:$0xff]   ;;  %v3693_v43 = vld [vmem:[%s4123_s8 + $0x70] sm:$0xff]   ;;  %v936_v45 = vshll.u32 %v3696_v36, 16  ;;  %v924_v47 = vrot.slane %v922_v39, 1  ;;  %v913_v48 = vshrl.u32 %v3695_v34, 16  ;;  %v929_v49 = vshll.u32 %v3697_v40, 16  ;;  %vm4283_vm2 = vmand %vm328_vm0, %vm587_vm1 }
  0x40   : > { %749 = vrot.lane.b32.xlu1 %v3682_v22, %s3961_s21  ;;  %747 = vrot.lane.b32.xlu0 %v3683_v23, %s3961_s21  ;;  %v911_v46 = vor.u32 %v910_v38, %v906_v37  ;;  %v3698_v50 = vld [vmem:[%s4123_s8 + $0x30] sm:$0xff]   ;;  %v917_v51 = vrot.slane %v915_v42, 1  ;;  %v3699_v52 = vld [vmem:[%s4123_s8 + $0x28] sm:$0xff]   ;;  %v934_v53 = vshrl.u32 %v3696_v36, 16  ;;  %v927_v55 = vshrl.u32 %v3697_v40, 16  ;;  %vm4633_vm6 = vmand %vm1055_vm4, %vm1056_vm5 }
  0x41   : > { %v938_v54 = vrot.slane %v936_v45, 1  ;;  %v3700_v56 = vld [vmem:[%s4123_s8 + $0x40] sm:$0xff]   ;;  %v925_v57 = vor.u32 %v924_v47, %v920_v44  ;;  %v931_v58 = vrot.slane %v929_v49, 1  ;;  %v950_v59 = vshll.u32 %v3698_v50, 16  ;;  %v3701_v62 = vld [vmem:[%s4123_s8 + $0x38] sm:$0xff]   ;;  %v3702_v0 = vld [vmem:[%s4123_s8 + $0x50] sm:$0xff]  }
  0x42   : > { %v918_v60 = vor.u32 %v917_v51, %v913_v48  ;;  %v943_v61 = vshll.u32 %v3699_v52, 16  ;;  %v948_v63 = vshrl.u32 %v3698_v50, 16  ;;  %v964_v3 = vshll.u32 %v3700_v56, 16  ;;  %v3703_v8 = vld [vmem:[%s4123_s8 + $0x48] sm:$0xff]   ;;  %v3704_v10 = vld [vmem:[%s4123_s8 + $0x60] sm:$0xff]   ;;  %v3705_v11 = vld [vmem:[%s4123_s8 + $0x58] sm:$0xff]  }
  0x43   : > { %v939_v1 = vor.u32 %v938_v54, %v934_v53  ;;  %v952_v2 = vrot.slane %v950_v59, 1  ;;  %v932_v4 = vor.u32 %v931_v58, %v927_v55  ;;  %v941_v5 = vshrl.u32 %v3699_v52, 16  ;;  %v3706_v16 = vld [vmem:[%s4123_s8 + $0x70] sm:$0xff]   ;;  %v3707_v20 = vld [vmem:[%s4123_s8 + $0x68] sm:$0xff]   ;;  %v3709_v32 = vld [vmem:[%s4123_s8] sm:$0xff]  }
  0x44   : > { %753 = vrot.lane.b32.xlu1 %v3684_v25, %s3961_s21  ;;  %751 = vrot.lane.b32.xlu0 %v3685_v26, %s3961_s21  ;;  %v945_v6 = vrot.slane %v943_v61, 1  ;;  %v957_v7 = vshll.u32 %v3701_v62, 16  ;;  %v962_v9 = vshrl.u32 %v3700_v56, 16  ;;  %v966_v13 = vrot.slane %v964_v3, 1  ;;  %v4205_v34 = vld [vmem:[%s4123_s8 + $0x18] sm:$0xff]   ;;  %v4215_v50 = vld [vmem:[%s4123_s8 + $0x20] sm:$0xff]   ;;  %vm4752_vm8 = vmand %vm1375_vm7, %vm587_vm1 }
  0x45   : > { %v953_v12 = vor.u32 %v952_v2, %v948_v63  ;;  %v955_v14 = vshrl.u32 %v3701_v62, 16  ;;  %v978_v15 = vshll.u32 %v3702_v0, 16  ;;  %v971_v19 = vshll.u32 %v3703_v8, 16  ;;  %v4219_v55 = vld [vmem:[%s4123_s8 + $0x38] sm:$0xff]   ;;  %v3715_v62 = vld [vmem:[%s4123_s8 + $0x30] sm:$0xff]   ;;  %vm4774_vm9 = vmand %vm328_vm0, %vm1056_vm5 }
  0x46   : > { %v946_v17 = vor.u32 %v945_v6, %v941_v5  ;;  %v959_v18 = vrot.slane %v957_v7, 1  ;;  %v992_v21 = vshll.u32 %v3704_v10, 16  ;;  %v985_v22 = vshll.u32 %v3705_v11, 16  ;;  %vm4979_vm13 = vmand %vm1874_vm11, %vm1056_vm5 }
  0x47   : > { %v967_v23 = vor.u32 %v966_v13, %v962_v9  ;;  %v976_v24 = vshrl.u32 %v3702_v0, 16  ;;  %v980_v25 = vrot.slane %v978_v15, 1  ;;  %v1006_v26 = vshll.u32 %v3706_v16, 16 }
  0x48   : > { %757 = vrot.lane.b32.xlu1 %v3686_v27, %s3961_s21  ;;  %755 = vrot.lane.b32.xlu0 %v3687_v29, %s3961_s21  ;;  %v3708_v27 = vld [vmem:[%s4123_s8 + $0x8] sm:$0xff]   ;;  %v960_v28 = vor.u32 %v959_v18, %v955_v14  ;;  %v969_v29 = vshrl.u32 %v3703_v8, 16  ;;  %v990_v31 = vshrl.u32 %v3704_v10, 16  ;;  %v983_v36 = vshrl.u32 %v3705_v11, 16  ;;  %v4235_v8 = vld [vmem:[%s4123_s8 + $0x40] sm:$0xff]  }
  0x49   : > { %v987_v37 = vrot.slane %v985_v22, 1  ;;  %v1004_v38 = vshrl.u32 %v3706_v16, 16  ;;  %v981_v39 = vor.u32 %v980_v25, %v976_v24  ;;  %v1008_v40 = vrot.slane %v1006_v26, 1  ;;  %v4251_v22 = vld [vmem:[%s4123_s8 + $0x68] sm:$0xff]   ;;  %v4254_v24 = vld [vmem:[%s4123_s8 + $0x60] sm:$0xff]  }
  0x4a   : > { %v1223_v42 = vshrl.u32 %v3708_v27, 16  ;;  %v1216_v45 = vshrl.u32 %v3709_v32, 16  ;;  %v1226_v48 = vshll.u32 %v3708_v27, 16  ;;  %v1237_v49 = vshrl.u32 %v4205_v34, 16 }
  0x4b   : > { %v1219_v53 = vshll.u32 %v3709_v32, 16  ;;  %v988_v56 = vor.u32 %v987_v37, %v983_v36  ;;  %v1240_v59 = vshll.u32 %v4205_v34, 16  ;;  %v1244_v61 = vshrl.u32 %v4215_v50, 16 }
  0x4c   : > { %761 = vrot.lane.b32.xlu1 %v3688_v30, %s3961_s21  ;;  %759 = vrot.lane.b32.xlu0 %v3689_v33, %s3961_s21  ;;  %v973_v30 = vrot.slane %v971_v19, 1  ;;  %v999_v33 = vshll.u32 %v3707_v20, 16  ;;  %v1225_v52 = vrot.slane %v1223_v42, 7  ;;  %v1009_v63 = vor.u32 %v1008_v40, %v1004_v38  ;;  %v4268_v40 = vld [vmem:[%s4123_s8 + $0x78] sm:$0xff]   ;;  %v4272_v42 = vld [vmem:[%s4123_s8 + $0x70] sm:$0xff]  }
  0x4d   : > { %v1239_v0 = vrot.slane %v1237_v49, 7  ;;  %v1265_v5 = vshrl.u32 %v4219_v55, 16  ;;  %v1246_v9 = vrot.slane %v1244_v61, 7  ;;  %v1268_v10 = vshll.u32 %v4219_v55, 16 }
  0x4e   : > { %v974_v44 = vor.u32 %v973_v30, %v969_v29  ;;  %v1001_v47 = vrot.slane %v999_v33, 1  ;;  %v1258_v11 = vshrl.u32 %v3715_v62, 16  ;;  %v1261_v13 = vshll.u32 %v3715_v62, 16 }
  0x4f   : > { %v1228_v15 = vor.u32 %v1226_v48, %v1225_v52  ;;  %v1267_v16 = vrot.slane %v1265_v5, 7  ;;  %v1272_v19 = vshrl.u32 %v4235_v8, 16  ;;  %v1242_v25 = vor.u32 %v1240_v59, %v1239_v0  ;;  %v3740_v59 = vld [vmem:[%s4123_s8 + $0x18] sm:$0xff]  }
  0x50   : > { %765 = vrot.lane.b32.xlu1 %v3690_v35, %s3961_s21  ;;  %763 = vrot.lane.b32.xlu0 %v3691_v41, %s3961_s21  ;;  %v994_v35 = vrot.slane %v992_v21, 1  ;;  %v997_v41 = vshrl.u32 %v3707_v20, 16  ;;  %v4247_v20 = vld [vmem:[%s4123_s8 + $0x50] sm:$0xff]   ;;  %v1275_v27 = vshll.u32 %v4235_v8, 16  ;;  %v1307_v33 = vshrl.u32 %v4251_v22, 16 }
  0x51   : > { %v1274_v29 = vrot.slane %v1272_v19, 7  ;;  %v1286_v30 = vshrl.u32 %v4247_v20, 16  ;;  %v1300_v34 = vshrl.u32 %v4254_v24, 16  ;;  %v1289_v36 = vshll.u32 %v4247_v20, 16 }
  0x52   : > { %v995_v51 = vor.u32 %v994_v35, %v990_v31  ;;  %v1002_v6 = vor.u32 %v1001_v47, %v997_v41  ;;  %v1310_v37 = vshll.u32 %v4251_v22, 16  ;;  %v1303_v41 = vshll.u32 %v4254_v24, 16 }
  0x53   : > { %v1270_v47 = vor.u32 %v1268_v10, %v1267_v16  ;;  %v1314_v55 = vshrl.u32 %v4272_v42, 16  ;;  %v1277_v61 = vor.u32 %v1275_v27, %v1274_v29  ;;  %v487_v0 = vshrl.u32 %v3740_v59, 16 }
  0x54   : > { %1010 = vrot.lane.b32.xlu1 %v911_v46, %s3963_s24  ;;  %767 = vrot.lane.b32.xlu0 %v3693_v43, %s3961_s21  ;;  %v3711_v43 = vld [vmem:[%s4123_s8 + $0x10] sm:$0xff]   ;;  %v4211_v46 = vld [vmem:[%s4123_s8 + $0x28] sm:$0xff]   ;;  %vm2180_vm12 = vcmask 917248   ;;  %vm2377_vm15 = vcmask 1048448  }
  0x55   : > { %v1230_v54 = vshrl.u32 %v3711_v43, 16  ;;  %v1251_v58 = vshrl.u32 %v4211_v46, 16  ;;  %v1254_v3 = vshll.u32 %v4211_v46, 16  ;;  %v3737_v46 = vld [vmem:[%s4123_s8] sm:$0xff]   ;;  %v489_v5 = vrot.slane %v487_v0, 7  ;;  %vm4988_vm14 = vmand %vm2180_vm12, %vm587_vm1 }
  0x56   : > { %v469_v52 = vshll.u32 %v3737_v46, 16  ;;  %v1316_v24 = vrot.slane %v1314_v55, 7  ;;  %v3756_v55 = vld [vmem:[%s4123_s8 + $0x58] sm:$0xff]  }
  0x57   : > { %v1232_v2 = vrot.slane %v1230_v54, 7  ;;  %v1253_v7 = vrot.slane %v1251_v58, 7  ;;  %v1324_v54 = vshll.u32 %v4268_v40, 16  ;;  %v546_v0 = vshll.u32 %v3756_v55, 16 }
  0x58   : > { %1014 = vrot.lane.b32.xlu1 %v925_v57, %s3963_s24  ;;  %1012 = vrot.lane.b32.xlu0 %v918_v60, %s3963_s24  ;;  %v1218_v57 = vrot.slane %v1216_v45, 7  ;;  %v1233_v60 = vshll.u32 %v3711_v43, 16  ;;  %v1309_v43 = vrot.slane %v1307_v33, 7  ;;  %v3736_v45 = vld [vmem:[%s4123_s8 + $0x10] sm:$0xff]  }
  0x59   : > { %v1256_v35 = vor.u32 %v1254_v3, %v1253_v7  ;;  %v480_v49 = vshrl.u32 %v3736_v45, 16  ;;  %v3744_v7 = vld [vmem:[%s4123_s8 + $0x28] sm:$0xff]  }
  0x5a   : > { %v1221_v18 = vor.u32 %v1219_v53, %v1218_v57  ;;  %v1321_v53 = vshrl.u32 %v4268_v40, 16  ;;  %v1312_v22 = vor.u32 %v1310_v37, %v1309_v43 }
  0x5c   : > { %1018 = vrot.lane.b32.xlu1 %v939_v1, %s3963_s24  ;;  %1016 = vrot.lane.b32.xlu0 %v932_v4, %s3963_s24  ;;  %v4227_v1 = vld [vmem:[%s4123_s8 + $0x48] sm:$0xff]   ;;  %v1247_v4 = vshll.u32 %v4215_v50, 16  ;;  %v483_v50 = vshll.u32 %v3736_v45, 16 }
  0x5d   : > { %v1279_v14 = vshrl.u32 %v4227_v1, 16  ;;  %v3724_v45 = vld [vmem:[%s4123_s8 + $0x8] sm:$0xff]  }
  0x5e   : > { %v1249_v38 = vor.u32 %v1247_v4, %v1246_v9 }
  0x5f   : > { %v1281_v26 = vrot.slane %v1279_v14, 7  ;;  %v501_v14 = vshrl.u32 %v3744_v7, 16 }
  0x60   : > { %1022 = vrot.lane.b32.xlu1 %v953_v12, %s3963_s24  ;;  %1020 = vrot.lane.b32.xlu0 %v946_v17, %s3963_s24  ;;  %v4239_v12 = vld [vmem:[%s4123_s8 + $0x58] sm:$0xff]   ;;  %v1282_v17 = vshll.u32 %v4227_v1, 16  ;;  %v490_v1 = vshll.u32 %v3740_v59, 16 }
  0x61   : > { %v1293_v21 = vshrl.u32 %v4239_v12, 16  ;;  %v1296_v32 = vshll.u32 %v4239_v12, 16 }
  0x62   : > { %v492_v12 = vor.u32 %v490_v1, %v489_v5 }
  0x63   : > { %v1295_v31 = vrot.slane %v1293_v21, 7  ;;  %v503_v21 = vrot.slane %v501_v14, 7 }
  0x64   : > { %1026 = vrot.lane.b32.xlu1 %v967_v23, %s3963_s24  ;;  %1024 = vrot.lane.b32.xlu0 %v960_v28, %s3963_s24  ;;  %v1260_v23 = vrot.slane %v1258_v11, 7  ;;  %v1235_v28 = vor.u32 %v1233_v60, %v1232_v2  ;;  %v1284_v60 = vor.u32 %v1282_v17, %v1281_v26  ;;  %v3741_v2 = vld [vmem:[%s4123_s8 + $0x8] sm:$0xff]   ;;  %v3745_v11 = vld [vmem:[%s4123_s8 + $0x20] sm:$0xff]   ;;  %v599_v19 = vsel %vm4283_vm2, %v492_v12, 0 }
  0x65   : > { %v1298_v8 = vor.u32 %v1296_v32, %v1295_v31  ;;  %v476_v10 = vshll.u32 %v3741_v2, 16  ;;  %v494_v16 = vshrl.u32 %v3745_v11, 16  ;;  %v497_v17 = vshll.u32 %v3745_v11, 16  ;;  %600 = vst [vmem:[#allocation2 + $0x40] sm:$0xff] %v599_v19  ;;  %v3748_v26 = vld [vmem:[%s4123_s8 + $0x38] sm:$0xff]   ;;  %v3749_v31 = vld [vmem:[%s4123_s8 + $0x30] sm:$0xff]  }
  0x66   : > { %v1263_v48 = vor.u32 %v1261_v13, %v1260_v23  ;;  %v1323_v23 = vrot.slane %v1321_v53, 7  ;;  %v515_v33 = vshrl.u32 %v3748_v26, 16  ;;  %v508_v37 = vshrl.u32 %v3749_v31, 16 }
  0x67   : > { %v511_v40 = vshll.u32 %v3749_v31, 16  ;;  %v3733_v31 = vld [vmem:[%s4123_s8 + $0x40] sm:$0xff]  }
  0x68   : > { %1030 = vrot.lane.b32.xlu1 %v981_v39, %s3963_s24  ;;  %1028 = vrot.lane.b32.xlu0 %v974_v44, %s3963_s24  ;;  %v1288_v39 = vrot.slane %v1286_v30, 7  ;;  %v1302_v44 = vrot.slane %v1300_v34, 7  ;;  %v518_v34 = vshll.u32 %v3748_v26, 16 }
  0x6a   : > { %v1291_v9 = vor.u32 %v1289_v36, %v1288_v39  ;;  %v1305_v27 = vor.u32 %v1303_v41, %v1302_v44  ;;  %v517_v39 = vrot.slane %v515_v33, 7  ;;  %v510_v41 = vrot.slane %v508_v37, 7  ;;  %v3753_v44 = vld [vmem:[%s4123_s8 + $0x40] sm:$0xff]   ;;  %v4370_v37 = vld [vmem:[%s4123_s8 + $0x28] sm:$0xff]  }
  0x6c   : > { %1034 = vrot.lane.b32.xlu1 %v995_v51, %s3963_s24  ;;  %1032 = vrot.lane.b32.xlu0 %v988_v56, %s3963_s24  ;;  %v466_v51 = vshrl.u32 %v3737_v46, 16  ;;  %v482_v56 = vrot.slane %v480_v49, 7  ;;  %v520_v43 = vor.u32 %v518_v34, %v517_v39  ;;  %v3725_v46 = vld [vmem:[%s4123_s8] sm:$0xff]   ;;  %v3734_v39 = vld [vmem:[%s4123_s8 + $0x58] sm:$0xff]  }
  0x6e   : > { %v468_v58 = vrot.slane %v466_v51, 7  ;;  %v485_v62 = vor.u32 %v483_v50, %v482_v56  ;;  %v611_v50 = vsel %vm4283_vm2, %v520_v43, 0  ;;  %v522_v51 = vshrl.u32 %v3753_v44, 16  ;;  %v4379_v43 = vld [vmem:[%s4123_s8 + $0x20] sm:$0xff]  }
  0x6f   : > { %612 = vst [vmem:[#allocation2 + $0x80] sm:$0xff] %v611_v50  ;;  %v1752_v50 = vshll.u32 %v4370_v37, 16 }
  0x70   : > { %1038 = vrot.lane.b32.xlu1 %v1009_v63, %s3963_s24  ;;  %1036 = vrot.lane.b32.xlu0 %v1002_v6, %s3963_s24  ;;  %v471_v63 = vor.u32 %v469_v52, %v468_v58  ;;  %v596_v3 = vsel %vm4283_vm2, %v485_v62, 0  ;;  %v473_v6 = vshrl.u32 %v3741_v2, 16  ;;  %v525_v52 = vshll.u32 %v3753_v44, 16  ;;  %v3726_v58 = vld [vmem:[%s4123_s8 + $0x18] sm:$0xff]   ;;  %v3727_v62 = vld [vmem:[%s4123_s8 + $0x10] sm:$0xff]  }
  0x71   : > { %597 = vst [vmem:[#allocation2 + $0x30] sm:$0xff] %v596_v3  ;;  %v524_v56 = vrot.slane %v522_v51, 7 }
  0x72   : > { %v590_v4 = vsel %vm4283_vm2, %v471_v63, 0  ;;  %v475_v13 = vrot.slane %v473_v6, 7  ;;  %v3728_v6 = vld [vmem:[%s4123_s8 + $0x28] sm:$0xff]  }
  0x73   : > { %591 = vst [vmem:[#allocation2 + $0x10] sm:$0xff] %v590_v4  ;;  %v527_v63 = vor.u32 %v525_v52, %v524_v56 }
  0x74   : > { %1329 = vrot.lane.b32.xlu1 %v1228_v15, %s3964_s25  ;;  %1327 = vrot.lane.b32.xlu0 %v1221_v18, %s3964_s25  ;;  %v504_v15 = vshll.u32 %v3744_v7, 16  ;;  %v1317_v18 = vshll.u32 %v4272_v42, 16  ;;  %v478_v20 = vor.u32 %v476_v10, %v475_v13  ;;  %v3752_v42 = vld [vmem:[%s4123_s8 + $0x48] sm:$0xff]   ;;  %v3761_v13 = vld [vmem:[%s4123_s8 + $0x60] sm:$0xff]  }
  0x75   : > { %v532_v49 = vshll.u32 %v3752_v42, 16  ;;  %v614_v4 = vsel %vm4283_vm2, %v527_v63, 0  ;;  %v3760_v10 = vld [vmem:[%s4123_s8 + $0x68] sm:$0xff]   ;;  %v550_v19 = vshrl.u32 %v3761_v13, 16 }
  0x76   : > { %v506_v29 = vor.u32 %v504_v15, %v503_v21  ;;  %615 = vst [vmem:[#allocation2 + $0x90] sm:$0xff] %v614_v4  ;;  %v557_v14 = vshrl.u32 %v3760_v10, 16  ;;  %v560_v15 = vshll.u32 %v3760_v10, 16  ;;  %v1743_v4 = vshrl.u32 %v4379_v43, 16 }
  0x78   : > { %1333 = vrot.lane.b32.xlu1 %v1242_v25, %s3964_s25  ;;  %1331 = vrot.lane.b32.xlu0 %v1235_v28, %s3964_s25  ;;  %v496_v25 = vrot.slane %v494_v16, 7  ;;  %v593_v28 = vsel %vm4283_vm2, %v478_v20, 0  ;;  %v605_v32 = vsel %vm4283_vm2, %v506_v29, 0  ;;  %v3730_v16 = vld [vmem:[%s4123_s8 + $0x38] sm:$0xff]   ;;  %v553_v20 = vshll.u32 %v3761_v13, 16  ;;  %v4355_v29 = vld [vmem:[%s4123_s8] sm:$0xff]  }
  0x79   : > { %594 = vst [vmem:[#allocation2 + $0x20] sm:$0xff] %v593_v28  ;;  %606 = vst [vmem:[#allocation2 + $0x60] sm:$0xff] %v605_v32  ;;  %v559_v21 = vrot.slane %v557_v14, 7  ;;  %v4360_v32 = vld [vmem:[%s4123_s8 + $0x18] sm:$0xff]   ;;  %v1715_v57 = vshrl.u32 %v4355_v29, 16  ;;  %v4423_v13 = vld [vmem:[%s4123_s8 + $0x50] sm:$0xff]  }
  0x7a   : > { %v499_v30 = vor.u32 %v497_v17, %v496_v25  ;;  %v3731_v17 = vld [vmem:[%s4123_s8 + $0x30] sm:$0xff]   ;;  %v4351_v25 = vld [vmem:[%s4123_s8 + $0x8] sm:$0xff]  }
  0x7b   : > { %v562_v26 = vor.u32 %v560_v15, %v559_v21 }
  0x7c   : > { %1337 = vrot.lane.b32.xlu1 %v1256_v35, %s3964_s25  ;;  %1335 = vrot.lane.b32.xlu0 %v1249_v38, %s3964_s25  ;;  %v1326_v35 = vor.u32 %v1324_v54, %v1323_v23  ;;  %v602_v36 = vsel %vm4283_vm2, %v499_v30, 0  ;;  %v1319_v38 = vor.u32 %v1317_v18, %v1316_v24  ;;  %v552_v23 = vrot.slane %v550_v19, 7  ;;  %v3732_v24 = vld [vmem:[%s4123_s8 + $0x48] sm:$0xff]  }
  0x7d   : > { %603 = vst [vmem:[#allocation2 + $0x50] sm:$0xff] %v602_v36  ;;  %v629_v33 = vsel %vm4283_vm2, %v562_v26, 0  ;;  %v4433_v19 = vld [vmem:[%s4123_s8 + $0x68] sm:$0xff]   ;;  %v4443_v26 = vld [vmem:[%s4123_s8 + $0x60] sm:$0xff]  }
  0x7e   : > { %v555_v30 = vor.u32 %v553_v20, %v552_v23  ;;  %630 = vst [vmem:[#allocation2 + $0xe0] sm:$0xff] %v629_v33 }
  0x80   : > { %1341 = vrot.lane.b32.xlu1 %v1270_v47, %s3964_s25  ;;  %1339 = vrot.lane.b32.xlu0 %v1263_v48, %s3964_s25  ;;  %v513_v47 = vor.u32 %v511_v40, %v510_v41  ;;  %v529_v48 = vshrl.u32 %v3752_v42, 16  ;;  %v626_v36 = vsel %vm4283_vm2, %v555_v30, 0  ;;  %v3735_v40 = vld [vmem:[%s4123_s8 + $0x50] sm:$0xff]   ;;  %v1724_v41 = vshll.u32 %v4351_v25, 16 }
  0x81   : > { %627 = vst [vmem:[#allocation2 + $0xd0] sm:$0xff] %v626_v36  ;;  %v1717_v42 = vshll.u32 %v4355_v29, 16  ;;  %v1787_v30 = vshll.u32 %v4423_v13, 16 }
  0x82   : > { %v608_v53 = vsel %vm4283_vm2, %v513_v47, 0  ;;  %v531_v54 = vrot.slane %v529_v48, 7  ;;  %v3739_v47 = vld [vmem:[%s4123_s8 + $0x60] sm:$0xff]   ;;  %v1722_v48 = vshrl.u32 %v4351_v25, 16  ;;  %v1726_v51 = vrot.slane %v1724_v41, 1 }
  0x83   : > { %609 = vst [vmem:[#allocation2 + $0x70] sm:$0xff] %v608_v53  ;;  %v1719_v52 = vrot.slane %v1717_v42, 1  ;;  %v4392_v53 = vld [vmem:[%s4123_s8 + $0x38] sm:$0xff]  }
  0x84   : > { %1345 = vrot.lane.b32.xlu1 %v1284_v60, %s3964_s25  ;;  %1343 = vrot.lane.b32.xlu0 %v1277_v61, %s3964_s25  ;;  %v534_v59 = vor.u32 %v532_v49, %v531_v54  ;;  %v543_v60 = vshrl.u32 %v3756_v55, 16  ;;  %v3757_v61 = vld [vmem:[%s4123_s8 + $0x50] sm:$0xff]   ;;  %v1745_v54 = vshll.u32 %v4379_v43, 16  ;;  %v1764_v10 = vshrl.u32 %v4392_v53, 16 }
  0x85   : > { %v536_v3 = vshrl.u32 %v3757_v61, 16  ;;  %v539_v5 = vshll.u32 %v3757_v61, 16  ;;  %v4397_v55 = vld [vmem:[%s4123_s8 + $0x30] sm:$0xff]   ;;  %v1727_v15 = vor.u32 %v1726_v51, %v1722_v48  ;;  %v1720_v20 = vor.u32 %v1719_v52, %v1715_v57 }
  0x86   : > { %v617_v1 = vsel %vm4283_vm2, %v534_v59, 0  ;;  %v545_v2 = vrot.slane %v543_v60, 7  ;;  %v1736_v59 = vshrl.u32 %v4360_v32, 16 }
  0x87   : > { %618 = vst [vmem:[#allocation2 + $0xa0] sm:$0xff] %v617_v1 }
  0x88   : > { %1349 = vrot.lane.b32.xlu1 %v1298_v8, %s3964_s25  ;;  %1347 = vrot.lane.b32.xlu0 %v1291_v9, %s3964_s25  ;;  %v548_v7 = vor.u32 %v546_v0, %v545_v2  ;;  %v538_v8 = vrot.slane %v536_v3, 7  ;;  %v3729_v9 = vld [vmem:[%s4123_s8 + $0x20] sm:$0xff]   ;;  %v3743_v0 = vld [vmem:[%s4123_s8 + $0x70] sm:$0xff]   ;;  %v1750_v2 = vshrl.u32 %v4370_v37, 16  ;;  %v1754_v3 = vrot.slane %v1752_v50, 1 }
  0x89   : > { %v4480_v50 = vrot.slane %v1787_v30, 1 }
  0x8a   : > { %v623_v11 = vsel %vm4283_vm2, %v548_v7, 0  ;;  %v541_v12 = vor.u32 %v539_v5, %v538_v8  ;;  %v1766_v5 = vshll.u32 %v4392_v53, 16  ;;  %v1747_v7 = vrot.slane %v1745_v54, 1 }
  0x8b   : > { %624 = vst [vmem:[#allocation2 + $0xc0] sm:$0xff] %v623_v11  ;;  %v1759_v8 = vshll.u32 %v4397_v55, 16  ;;  %v1755_v42 = vor.u32 %v1754_v3, %v1750_v2  ;;  %v1799_v54 = vshrl.u32 %v4443_v26, 16 }
  0x8c   : > { %1353 = vrot.lane.b32.xlu1 %v1312_v22, %s3964_s25  ;;  %1351 = vrot.lane.b32.xlu0 %v1305_v27, %s3964_s25  ;;  %v620_v18 = vsel %vm4283_vm2, %v541_v12, 0  ;;  %v3764_v22 = vld [vmem:[%s4123_s8 + $0x70] sm:$0xff]   ;;  %v4420_v12 = vld [vmem:[%s4123_s8 + $0x58] sm:$0xff]  }
  0x8d   : > { %621 = vst [vmem:[#allocation2 + $0xb0] sm:$0xff] %v620_v18  ;;  %v564_v27 = vshrl.u32 %v3764_v22, 16  ;;  %v567_v28 = vshll.u32 %v3764_v22, 16  ;;  %v4436_v21 = vrot.slane %v1759_v8, 1  ;;  %v1794_v29 = vshll.u32 %v4420_v12, 16 }
  0x8e   : > { %v1792_v37 = vshrl.u32 %v4420_v12, 16 }
  0x8f   : > { %v566_v34 = vrot.slane %v564_v27, 7  ;;  %v4446_v27 = vld [vmem:[%s4123_s8 + $0x78] sm:$0xff]  }
  0x90   : > { %1357 = vrot.lane.b32.xlu1 %v1326_v35, %s3964_s25  ;;  %1355 = vrot.lane.b32.xlu0 %v1319_v38, %s3964_s25  ;;  %v4365_v35 = vld [vmem:[%s4123_s8 + $0x10] sm:$0xff]  }
  0x91   : > { %v569_v38 = vor.u32 %v567_v28, %v566_v34  ;;  %v1731_v49 = vshll.u32 %v4365_v35, 16  ;;  %v1729_v61 = vshrl.u32 %v4365_v35, 16  ;;  %v1808_v35 = vshll.u32 %v4433_v19, 16 }
  0x93   : > { %v632_v44 = vsel %vm4283_vm2, %v569_v38, 0  ;;  %v1733_v1 = vrot.slane %v1731_v49, 1  ;;  %v1785_v38 = vshrl.u32 %v4423_v13, 16  ;;  %v4478_v49 = vrot.slane %v1794_v29, 1 }
  0x94   : > { %1539 = vrot.lane.b32.xlu1 %v3724_v45, %s3965_s26  ;;  %1537 = vrot.lane.b32.xlu0 %v3725_v46, %s3965_s26  ;;  %v3738_v45 = vld [vmem:[%s4123_s8 + $0x68] sm:$0xff]   ;;  %v1738_v46 = vshll.u32 %v4360_v32, 16  ;;  %633 = vst [vmem:[#allocation2 + $0xf0] sm:$0xff] %v632_v44  ;;  %v4455_v32 = vld [vmem:[%s4123_s8 + $0x10] sm:$0xff]   ;;  %v1801_v44 = vshll.u32 %v4443_v26, 16  ;;  %v4486_v52 = vrot.slane %v1808_v35, 1 }
  0x95   : > { %v1734_v36 = vor.u32 %v1733_v1, %v1729_v61  ;;  %v2038_v57 = vshrl.u32 %v4455_v32, 16  ;;  %v4496_v61 = vld [vmem:[%s4123_s8 + $0x30] sm:$0xff]  }
  0x96   : > { %v1740_v60 = vrot.slane %v1738_v46, 1  ;;  %v4472_v46 = vld [vmem:[%s4123_s8 + $0x20] sm:$0xff]   ;;  %v2069_v30 = vshll.u32 %v4496_v61, 16 }
  0x97   : > { %v2052_v2 = vshrl.u32 %v4472_v46, 16  ;;  %v4507_v43 = vrot.slane %v2038_v57, 7  ;;  %v1790_v57 = vor.u32 %v4480_v50, %v1785_v38 }
  0x98   : > { %1543 = vrot.lane.b32.xlu1 %v3726_v58, %s3965_s26  ;;  %1541 = vrot.lane.b32.xlu0 %v3727_v62, %s3965_s26  ;;  %v3742_v58 = vld [vmem:[%s4123_s8 + $0x78] sm:$0xff]   ;;  %v4403_v62 = vld [vmem:[%s4123_s8 + $0x48] sm:$0xff]   ;;  %v1741_v33 = vor.u32 %v1740_v60, %v1736_v59  ;;  %v1748_v59 = vor.u32 %v1747_v7, %v1743_v4  ;;  %v2041_v4 = vshll.u32 %v4455_v32, 16 }
  0x99   : > { %v1780_v11 = vshll.u32 %v4403_v62, 16  ;;  %v1778_v22 = vshrl.u32 %v4403_v62, 16  ;;  %v4511_v7 = vld [vmem:[%s4123_s8 + $0x28] sm:$0xff]   ;;  %v4527_v53 = vrot.slane %v2052_v2, 7 }
  0x9c   : > { %1547 = vrot.lane.b32.xlu1 %v3728_v6, %s3965_s26  ;;  %1545 = vrot.lane.b32.xlu0 %v3729_v9, %s3965_s26  ;;  %v4413_v6 = vld [vmem:[%s4123_s8 + $0x40] sm:$0xff]  }
  0x9d   : > { %v1773_v18 = vshll.u32 %v4413_v6, 16  ;;  %v1771_v25 = vshrl.u32 %v4413_v6, 16  ;;  %v2062_v6 = vshll.u32 %v4511_v7, 16 }
  0x9f   : > { %v4459_v34 = vrot.slane %v1773_v18, 1 }
  0xa0   : > { %1551 = vrot.lane.b32.xlu1 %v3730_v16, %s3965_s26  ;;  %1549 = vrot.lane.b32.xlu0 %v3731_v17, %s3965_s26  ;;  %v4428_v16 = vrot.slane %v1766_v5, 1  ;;  %v1757_v17 = vshrl.u32 %v4397_v55, 16 }
  0xa1   : > { %v1776_v35 = vor.u32 %v4459_v34, %v1771_v25  ;;  %v4568_v34 = vld [vmem:[%s4123_s8 + $0x58] sm:$0xff]  }
  0xa2   : > { %v2104_v26 = vshll.u32 %v4568_v34, 16 }
  0xa4   : > { %1555 = vrot.lane.b32.xlu1 %v3732_v24, %s3965_s26  ;;  %1553 = vrot.lane.b32.xlu0 %v3733_v31, %s3965_s26  ;;  %v4439_v24 = vrot.slane %v1780_v11, 1  ;;  %v4452_v31 = vld [vmem:[%s4123_s8 + $0x70] sm:$0xff]  }
  0xa5   : > { %v1815_v51 = vshll.u32 %v4452_v31, 16 }
  0xa6   : > { %v1783_v29 = vor.u32 %v4439_v24, %v1778_v22 }
  0xa7   : > { %v4505_v8 = vrot.slane %v1815_v51, 1  ;;  %v4577_v51 = vld [vmem:[%s4123_s8 + $0x70] sm:$0xff]  }
  0xa8   : > { %1559 = vrot.lane.b32.xlu1 %v3734_v39, %s3965_s26  ;;  %1557 = vrot.lane.b32.xlu0 %v3735_v40, %s3965_s26  ;;  %v1806_v39 = vshrl.u32 %v4433_v19, 16  ;;  %v4467_v40 = vld [vmem:[%s4123_s8 + $0x8] sm:$0xff]  }
  0xa9   : > { %v2031_v60 = vshrl.u32 %v4467_v40, 16  ;;  %v2034_v11 = vshll.u32 %v4467_v40, 16 }
  0xaa   : > { %v744_v56 = vpop.permute.xlu1 %743  ;;  %v740_v63 = vpop.permute.xlu0 %739  ;;  %v1811_v13 = vor.u32 %v4486_v52, %v1806_v39 }
  0xab   : > { %787 = vst.msk [vmem:[#allocation2 + $0x30] sm:$0xff] %vm784_vm3, %v744_v56  ;;  %785 = vst.msk [vmem:[#allocation2 + $0x10] sm:$0xff] %vm784_vm3, %v740_v63  ;;  %v1820_v56 = vshrl.u32 %v4446_v27, 16  ;;  %v4524_v18 = vrot.slane %v2031_v60, 7  ;;  %v4585_v60 = vld [vmem:[%s4123_s8 + $0x68] sm:$0xff]  }
  0xac   : > { %1563 = vrot.lane.b32.xlu1 %v3738_v45, %s3965_s26  ;;  %1561 = vrot.lane.b32.xlu0 %v3739_v47, %s3965_s26  ;;  %v1822_v45 = vshll.u32 %v4446_v27, 16  ;;  %v4475_v47 = vld [vmem:[%s4123_s8 + $0x18] sm:$0xff]  }
  0xad   : > { %v2045_v3 = vshrl.u32 %v4475_v47, 16 }
  0xae   : > { %v746_v9 = vpop.permute.xlu1 %745  ;;  %v742_v14 = vpop.permute.xlu0 %741  ;;  %v4500_v1 = vrot.slane %v1822_v45, 1  ;;  %v1797_v45 = vor.u32 %v4478_v49, %v1792_v37 }
  0xaf   : > { %788 = vst.msk [vmem:[#allocation2 + $0x40] sm:$0xff] %vm784_vm3, %v746_v9  ;;  %786 = vst.msk [vmem:[#allocation2 + $0x20] sm:$0xff] %vm784_vm3, %v742_v14  ;;  %v1769_v9 = vor.u32 %v4428_v16, %v1764_v10  ;;  %v2055_v14 = vshll.u32 %v4472_v46, 16  ;;  %v4529_v10 = vrot.slane %v2045_v3, 7  ;;  %v2048_v16 = vshll.u32 %v4475_v47, 16 }
  0xb0   : > { %1567 = vrot.lane.b32.xlu1 %v3742_v58, %s3965_s26  ;;  %1565 = vrot.lane.b32.xlu0 %v3743_v0, %s3965_s26  ;;  %v1813_v58 = vshrl.u32 %v4452_v31, 16  ;;  %v4498_v0 = vrot.slane %v1801_v44, 1  ;;  %v4560_v44 = vld [vmem:[%s4123_s8 + $0x60] sm:$0xff]   ;;  %v2043_v31 = vor.u32 %v2041_v4, %v4507_v43 }
  0xb1   : > { %v2108_v2 = vshrl.u32 %v4560_v44, 16  ;;  %v2111_v39 = vshll.u32 %v4560_v44, 16  ;;  %v2057_v32 = vor.u32 %v2055_v14, %v4527_v53  ;;  %v2050_v40 = vor.u32 %v2048_v16, %v4529_v10  ;;  %v3802_v53 = vld [vmem:[%s4123_s8 + $0x10] sm:$0xff]  }
  0xb2   : > { %v750_v23 = vpop.permute.xlu1 %749  ;;  %v748_v28 = vpop.permute.xlu0 %747 }
  0xb3   : > { %790 = vst.msk [vmem:[#allocation2 + $0x60] sm:$0xff] %vm784_vm3, %v750_v23  ;;  %789 = vst.msk [vmem:[#allocation2 + $0x50] sm:$0xff] %vm784_vm3, %v748_v28  ;;  %v4533_v28 = vld [vmem:[%s4123_s8 + $0x40] sm:$0xff]  }
  0xb4   : > { %1828 = vrot.lane.b32.xlu1 %v1727_v15, %s3966_s28  ;;  %1826 = vrot.lane.b32.xlu0 %v1720_v20, %s3966_s28  ;;  %v1762_v15 = vor.u32 %v4436_v21, %v1757_v17  ;;  %v2066_v20 = vshrl.u32 %v4496_v61, 16  ;;  %v2059_v17 = vshrl.u32 %v4511_v7, 16  ;;  %v4538_v21 = vld [vmem:[%s4123_s8 + $0x38] sm:$0xff]   ;;  %v2080_v62 = vshrl.u32 %v4533_v28, 16 }
  0xb5   : > { %v2083_v25 = vshll.u32 %v4533_v28, 16  ;;  %v3803_v7 = vld [vmem:[%s4123_s8 + $0x18] sm:$0xff]   ;;  %v4684_v28 = vld [vmem:[#allocation2 + $0x10] sm:$0xff] }
  0xb6   : > { %v754_v41 = vpop.permute.xlu1 %753  ;;  %v752_v48 = vpop.permute.xlu0 %751  ;;  %v4563_v24 = vrot.slane %v2059_v17, 7  ;;  %v2082_v37 = vrot.slane %v2080_v62, 7 }
  0xb7   : > { %792 = vst.msk [vmem:[#allocation2 + $0x80] sm:$0xff] %vm784_vm3, %v754_v41  ;;  %791 = vst.msk [vmem:[#allocation2 + $0x70] sm:$0xff] %vm784_vm3, %v752_v48  ;;  %v4556_v41 = vld [vmem:[%s4123_s8 + $0x48] sm:$0xff]   ;;  %v2073_v48 = vshrl.u32 %v4538_v21, 16 }
  0xb8   : > { %1832 = vrot.lane.b32.xlu1 %v1741_v33, %s3966_s28  ;;  %1830 = vrot.lane.b32.xlu0 %v1734_v36, %s3966_s28  ;;  %v4547_v33 = vld [vmem:[%s4123_s8 + $0x50] sm:$0xff]   ;;  %v4553_v36 = vrot.slane %v2066_v20, 7  ;;  %v2122_v20 = vshrl.u32 %v4577_v51, 16  ;;  %v2090_v19 = vshll.u32 %v4556_v41, 16  ;;  %v2085_v47 = vor.u32 %v2083_v25, %v2082_v37 }
  0xb9   : > { %v2094_v49 = vshrl.u32 %v4547_v33, 16  ;;  %v2075_v38 = vrot.slane %v2073_v48, 7  ;;  %v2097_v50 = vshll.u32 %v4547_v33, 16 }
  0xba   : > { %v758_v63 = vpop.permute.xlu1 %757  ;;  %v756_v5 = vpop.permute.xlu0 %755  ;;  %v2124_v62 = vrot.slane %v2122_v20, 7  ;;  %v2071_v46 = vor.u32 %v2069_v30, %v4553_v36  ;;  %v3804_v36 = vld [vmem:[%s4123_s8 + $0x20] sm:$0xff]   ;;  %v3807_v20 = vld [vmem:[%s4123_s8 + $0x38] sm:$0xff]  }
  0xbb   : > { %794 = vst.msk [vmem:[#allocation2 + $0xa0] sm:$0xff] %vm784_vm3, %v758_v63  ;;  %793 = vst.msk [vmem:[#allocation2 + $0x90] sm:$0xff] %vm784_vm3, %v756_v5  ;;  %v2087_v63 = vshrl.u32 %v4556_v41, 16  ;;  %v2101_v5 = vshrl.u32 %v4568_v34, 16  ;;  %v2096_v17 = vrot.slane %v2094_v49, 7  ;;  %v2118_v41 = vshll.u32 %v4585_v60, 16 }
  0xbc   : > { %1836 = vrot.lane.b32.xlu1 %v1755_v42, %s3966_s28  ;;  %1834 = vrot.lane.b32.xlu0 %v1748_v59, %s3966_s28  ;;  %v2076_v59 = vshll.u32 %v4538_v21, 16 }
  0xbd   : > { %v2089_v21 = vrot.slane %v2087_v63, 7  ;;  %v2103_v33 = vrot.slane %v2101_v5, 7  ;;  %v4673_v10 = vor.u32 %v2097_v50, %v2096_v17  ;;  %v2508_v63 = vshll.u32 %v3802_v53, 16 }
  0xbe   : > { %v762_v23 = vpop.permute.xlu1 %761  ;;  %v760_v55 = vpop.permute.xlu0 %759  ;;  %v2078_v14 = vor.u32 %v2076_v59, %v2075_v38  ;;  %v2522_v38 = vshll.u32 %v3804_v36, 16 }
  0xbf   : > { %796 = vst.msk [vmem:[#allocation2 + $0xc0] sm:$0xff] %vm784_vm3, %v762_v23  ;;  %795 = vst.msk [vmem:[#allocation2 + $0xb0] sm:$0xff] %vm784_vm3, %v760_v55  ;;  %v2115_v23 = vshrl.u32 %v4585_v60, 16  ;;  %v4675_v16 = vor.u32 %v2090_v19, %v2089_v21  ;;  %v4679_v30 = vor.u32 %v2104_v26, %v2103_v33  ;;  %v2510_v17 = vrot.slane %v2508_v63, 1  ;;  %v3809_v33 = vld [vmem:[%s4123_s8 + $0x48] sm:$0xff]  }
  0xc0   : > { %1840 = vrot.lane.b32.xlu1 %v1769_v9, %s3966_s28  ;;  %1838 = vrot.lane.b32.xlu0 %v1762_v15, %s3966_s28  ;;  %v4594_v9 = vld [vmem:[%s4123_s8 + $0x78] sm:$0xff]   ;;  %v1804_v15 = vor.u32 %v4498_v0, %v1799_v54  ;;  %v1825_v0 = vor.u32 %v4500_v1, %v1820_v56  ;;  %v2520_v26 = vshrl.u32 %v3804_v36, 16  ;;  %v2557_v63 = vshll.u32 %v3809_v33, 16 }
  0xc1   : > { %v2129_v54 = vshrl.u32 %v4594_v9, 16  ;;  %v2117_v44 = vrot.slane %v2115_v23, 7  ;;  %v2132_v27 = vshll.u32 %v4594_v9, 16  ;;  %v2506_v9 = vshrl.u32 %v3802_v53, 16  ;;  %v3808_v23 = vld [vmem:[%s4123_s8 + $0x40] sm:$0xff]  }
  0xc2   : > { %v766_v42 = vpop.permute.xlu1 %765  ;;  %v764_v22 = vpop.permute.xlu0 %763  ;;  %v2548_v53 = vshrl.u32 %v3808_v23, 16 }
  0xc3   : > { %798 = vst.msk [vmem:[#allocation2 + $0xe0] sm:$0xff] %vm784_vm3, %v766_v42  ;;  %797 = vst.msk [vmem:[#allocation2 + $0xd0] sm:$0xff] %vm784_vm3, %v764_v22  ;;  %v1818_v42 = vor.u32 %v4505_v8, %v1813_v58  ;;  %v2036_v58 = vor.u32 %v2034_v11, %v4524_v18  ;;  %v2064_v11 = vor.u32 %v2062_v6, %v4563_v24  ;;  %v3801_v18 = vld [vmem:[%s4123_s8 + $0x8] sm:$0xff]  }
  0xc4   : > { %1844 = vrot.lane.b32.xlu1 %v1783_v29, %s3966_s28  ;;  %1842 = vrot.lane.b32.xlu0 %v1776_v35, %s3966_s28  ;;  %v2110_v29 = vrot.slane %v2108_v2, 7  ;;  %v2125_v35 = vshll.u32 %v4577_v51, 16  ;;  %v3805_v24 = vld [vmem:[%s4123_s8 + $0x28] sm:$0xff]   ;;  %v4690_v48 = vor.u32 %v2118_v41, %v2117_v44  ;;  %v2501_v59 = vshll.u32 %v3801_v18, 16  ;;  %v3810_v44 = vld [vmem:[%s4123_s8 + $0x50] sm:$0xff]  }
  0xc5   : > { %v2499_v49 = vshrl.u32 %v3801_v18, 16  ;;  %v2515_v2 = vshll.u32 %v3803_v7, 16  ;;  %v2529_v19 = vshll.u32 %v3805_v24, 16  ;;  %v2543_v18 = vshll.u32 %v3807_v20, 16 }
  0xc6   : > { %v4587_v12 = vpop.permute.xlu1 %1010  ;;  %v768_v3 = vpop.permute.xlu0 %767  ;;  %v4677_v61 = vor.u32 %v2111_v39, %v2110_v29  ;;  %v4688_v25 = vor.u32 %v2125_v35, %v2124_v62  ;;  %v2503_v5 = vrot.slane %v2501_v59, 1  ;;  %v4713_v39 = vld [vmem:[#allocation2 + $0x50] sm:$0xff] }
  0xc7   : > { %799 = vst.msk [vmem:[#allocation2 + $0xf0] sm:$0xff] %vm784_vm3, %v768_v3  ;;  %v1059_v60 = vsel %vm4633_vm6, %v4587_v12, %v4684_v28  ;;  %v4701_v3 = vld [vmem:[#allocation2 + $0x30] sm:$0xff]  ;;  %v2517_v21 = vrot.slane %v2515_v2, 1 }
  0xc8   : > { %1848 = vrot.lane.b32.xlu1 %v1797_v45, %s3966_s28  ;;  %1846 = vrot.lane.b32.xlu0 %v1790_v57, %s3966_s28  ;;  %v2131_v45 = vrot.slane %v2129_v54, 7  ;;  %v3806_v57 = vld [vmem:[%s4123_s8 + $0x30] sm:$0xff]   ;;  %v2524_v54 = vrot.slane %v2522_v38, 1 }
  0xc9   : > { %v2536_v35 = vshll.u32 %v3806_v57, 16  ;;  %v3800_v38 = vld [vmem:[%s4123_s8 + $0x70] sm:$0xff]  }
  0xca   : > { %v4608_v55 = vpop.permute.xlu1 %1014  ;;  %v4612_v52 = vpop.permute.xlu0 %1012  ;;  %v4692_v51 = vor.u32 %v2132_v27, %v2131_v45  ;;  %v4729_v45 = vor.u32 %v2503_v5, %v2499_v49  ;;  %v2531_v27 = vrot.slane %v2529_v19, 1  ;;  %v4741_v59 = vor.u32 %v2524_v54, %v2520_v26 }
  0xcb   : > { %v1065_v50 = vsel %vm4633_vm6, %v4608_v55, %v4701_v3  ;;  %v2555_v49 = vshrl.u32 %v3809_v33, 16  ;;  %v2545_v5 = vrot.slane %v2543_v18, 1  ;;  %v4764_v33 = vld [vmem:[%s4123_s8 + $0x78] sm:$0xff]   ;;  %v3785_v3 = vld [vmem:[%s4123_s8 + $0x8] sm:$0xff]  }
  0xcc   : > { %1852 = vrot.lane.b32.xlu1 %v1811_v13, %s3966_s28  ;;  %1850 = vrot.lane.b32.xlu0 %v1804_v15, %s3966_s28  ;;  %v2513_v13 = vshrl.u32 %v3803_v7, 16  ;;  %v4708_v15 = vld [vmem:[#allocation2 + $0x20] sm:$0xff]  ;;  %v2550_v7 = vshll.u32 %v3808_v23, 16 }
  0xcd   : > { %v1062_v41 = vsel %vm4633_vm6, %v4612_v52, %v4708_v15 }
  0xce   : > { %v4626_v22 = vpop.permute.xlu1 %1018  ;;  %v4628_v34 = vpop.permute.xlu0 %1016 }
  0xd0   : > { %1856 = vrot.lane.b32.xlu1 %v1825_v0, %s3966_s28  ;;  %1854 = vrot.lane.b32.xlu0 %v1818_v42, %s3966_s28  ;;  %v2527_v0 = vshrl.u32 %v3805_v24, 16  ;;  %v1071_v42 = vsel %vm4633_vm6, %v4626_v22, %v4713_v39  ;;  %v3812_v24 = vld [vmem:[%s4123_s8 + $0x60] sm:$0xff]   ;;  %v3787_v22 = vld [vmem:[%s4123_s8 + $0x18] sm:$0xff]   ;;  %v1076_v39 = vld [vmem:[#allocation2 + $0x70] sm:$0xff] }
  0xd2   : > { %v4645_v1 = vpop.permute.xlu1 %1022  ;;  %v4647_v8 = vpop.permute.xlu0 %1020 }
  0xd4   : > { %2137 = vrot.lane.b32.xlu1 %v2043_v31, %s3967_s5  ;;  %2135 = vrot.lane.b32.xlu0 %v2036_v58, %s3967_s5  ;;  %v3811_v31 = vld [vmem:[%s4123_s8 + $0x58] sm:$0xff]   ;;  %v4733_v58 = vor.u32 %v2510_v17, %v2506_v9  ;;  %v2562_v9 = vshrl.u32 %v3810_v44, 16  ;;  %v2559_v17 = vrot.slane %v2557_v63, 1  ;;  %v2625_v63 = vld [vmem:[#allocation2 + $0x28] sm:$0xff] }
  0xd5   : > { %v2571_v19 = vshll.u32 %v3811_v31, 16 }
  0xd6   : > { %v4657_v43 = vpop.permute.xlu1 %1026  ;;  %v4659_v4 = vpop.permute.xlu0 %1024 }
  0xd8   : > { %2141 = vrot.lane.b32.xlu1 %v2057_v32, %s3967_s5  ;;  %2139 = vrot.lane.b32.xlu0 %v2050_v40, %s3967_s5  ;;  %v4735_v32 = vor.u32 %v2517_v21, %v2513_v13  ;;  %v2534_v40 = vshrl.u32 %v3806_v57, 16  ;;  %v3813_v57 = vld [vmem:[%s4123_s8 + $0x68] sm:$0xff]   ;;  %v2564_v13 = vshll.u32 %v3810_v44, 16  ;;  %v2569_v21 = vshrl.u32 %v3811_v31, 16 }
  0xd9   : > { %v4770_v44 = vor.u32 %v2559_v17, %v2555_v49  ;;  %v2622_v49 = vld [vmem:[#allocation2 + $0x18] sm:$0xff]  ;;  %v1077_v31 = vsel %vm4633_vm6, %v4645_v1, %v1076_v39  ;;  %v3790_v1 = vld [vmem:[%s4123_s8 + $0x20] sm:$0xff]  }
  0xda   : > { %v4686_v6 = vpop.permute.xlu1 %1030  ;;  %v4699_v37 = vpop.permute.xlu0 %1028  ;;  %v2566_v54 = vrot.slane %v2564_v13, 1  ;;  %v2599_v13 = vshll.u32 %v4764_v33, 16 }
  0xdc   : > { %2145 = vrot.lane.b32.xlu1 %v2071_v46, %s3967_s5  ;;  %2143 = vrot.lane.b32.xlu0 %v2064_v11, %s3967_s5  ;;  %v2538_v46 = vrot.slane %v2536_v35, 1  ;;  %v2541_v11 = vshrl.u32 %v3807_v20, 16  ;;  %v4757_v20 = vld [vmem:[%s4123_s8 + $0x70] sm:$0xff]  }
  0xdd   : > { %v2592_v28 = vshll.u32 %v4757_v20, 16 }
  0xde   : > { %v4715_v29 = vpop.permute.xlu1 %1034  ;;  %v4726_v62 = vpop.permute.xlu0 %1032  ;;  %v4759_v23 = vor.u32 %v2538_v46, %v2534_v40  ;;  %v4766_v26 = vor.u32 %v2545_v5, %v2541_v11  ;;  %v2578_v40 = vshll.u32 %v3812_v24, 16  ;;  %v2583_v46 = vshrl.u32 %v3813_v57, 16 }
  0xe0   : > { %2149 = vrot.lane.b32.xlu1 %v2085_v47, %s3967_s5  ;;  %2147 = vrot.lane.b32.xlu0 %v2078_v14, %s3967_s5  ;;  %v4743_v47 = vor.u32 %v2531_v27, %v2527_v0  ;;  %v2552_v14 = vrot.slane %v2550_v7, 1  ;;  %v2576_v0 = vshrl.u32 %v3812_v24, 16  ;;  %v2573_v27 = vrot.slane %v2571_v19, 1  ;;  %v2637_v19 = vld [vmem:[#allocation2 + $0x68] sm:$0xff] }
  0xe1   : > { %v2585_v7 = vshll.u32 %v3813_v57, 16  ;;  %v2590_v24 = vshrl.u32 %v4757_v20, 16  ;;  %v2580_v12 = vrot.slane %v2578_v40, 1  ;;  %v2594_v20 = vrot.slane %v2592_v28, 1  ;;  %v2643_v40 = vld [vmem:[#allocation2 + $0x88] sm:$0xff] }
  0xe2   : > { %v4738_v36 = vpop.permute.xlu1 %1038  ;;  %v4745_v2 = vpop.permute.xlu0 %1036 }
  0xe3   : > { %v2587_v57 = vrot.slane %v2585_v7, 1  ;;  %v2652_v7 = vld [vmem:[#allocation2 + $0xb8] sm:$0xff] }
  0xe4   : > { %2153 = vrot.lane.b32.xlu1 %v4673_v10, %s3967_s5  ;;  %2151 = vrot.lane.b32.xlu0 %v4675_v16, %s3967_s5  ;;  %v4768_v10 = vor.u32 %v2552_v14, %v2548_v53  ;;  %v2619_v16 = vld [vmem:[#allocation2 + $0x8] sm:$0xff]  ;;  %v4785_v53 = vor.u32 %v2566_v54, %v2562_v9  ;;  %v4792_v14 = vor.u32 %v2573_v27, %v2569_v21  ;;  %v2597_v9 = vshrl.u32 %v4764_v33, 16  ;;  %v2634_v21 = vld [vmem:[#allocation2 + $0x58] sm:$0xff] }
  0xe5   : > { %v2620_v17 = vsel %vm4774_vm9, %v4729_v45, %v2619_v16  ;;  %v2626_v27 = vsel %vm4774_vm9, %v4735_v32, %v2625_v63  ;;  %v2640_v33 = vld [vmem:[#allocation2 + $0x78] sm:$0xff]  ;;  %v2588_v16 = vor.u32 %v2587_v57, %v2583_v46  ;;  %v2649_v32 = vld [vmem:[#allocation2 + $0xa8] sm:$0xff]  ;;  %v2635_v46 = vsel %vm4774_vm9, %v4759_v23, %v2634_v21  ;;  %v1082_v21 = vld [vmem:[#allocation2 + $0x90] sm:$0xff] }
  0xe6   : > { %v1330_v35 = vpop.permute.xlu1 %1329  ;;  %v1328_v18 = vpop.permute.xlu0 %1327  ;;  %2621 = vst [vmem:[#allocation2 + $0x8] sm:$0xff] %v2620_v17  ;;  %2627 = vst [vmem:[#allocation2 + $0x28] sm:$0xff] %v2626_v27  ;;  %v2658_v63 = vld [vmem:[#allocation2 + $0xd8] sm:$0xff]  ;;  %v2641_v15 = vsel %vm4774_vm9, %v4768_v10, %v2640_v33 }
  0xe7   : > { %v1381_v11 = vsel %vm4752_vm8, %v1330_v35, %v1059_v60  ;;  %v1378_v5 = vsel %vm4752_vm8, %v1328_v18, 0  ;;  %v2628_v60 = vld [vmem:[#allocation2 + $0x38] sm:$0xff]  ;;  %v2581_v35 = vor.u32 %v2580_v12, %v2576_v0  ;;  %v2601_v18 = vrot.slane %v2599_v13, 1  ;;  %2636 = vst [vmem:[#allocation2 + $0x58] sm:$0xff] %v2635_v46  ;;  %2642 = vst [vmem:[#allocation2 + $0x78] sm:$0xff] %v2641_v15 }
  0xe8   : > { %1382 = vst [vmem:[#allocation2 + $0x10] sm:$0xff] %v1381_v11  ;;  %2157 = vrot.lane.b32.xlu1 %v4677_v61, %s3967_s5  ;;  %1379 = vst [vmem:[#allocation2] sm:$0xff] %v1378_v5  ;;  %2155 = vrot.lane.b32.xlu0 %v4679_v30, %s3967_s5  ;;  %v2631_v61 = vld [vmem:[#allocation2 + $0x48] sm:$0xff]  ;;  %v2623_v30 = vsel %vm4774_vm9, %v4733_v58, %v2622_v49  ;;  %v2646_v11 = vld [vmem:[#allocation2 + $0x98] sm:$0xff]  ;;  %v2629_v58 = vsel %vm4774_vm9, %v4741_v59, %v2628_v60 }
  0xe9   : > { %2624 = vst [vmem:[#allocation2 + $0x18] sm:$0xff] %v2623_v30  ;;  %v2655_v49 = vld [vmem:[#allocation2 + $0xc8] sm:$0xff]  ;;  %2630 = vst [vmem:[#allocation2 + $0x38] sm:$0xff] %v2629_v58  ;;  %v2632_v59 = vsel %vm4774_vm9, %v4743_v47, %v2631_v61  ;;  %v2602_v52 = vor.u32 %v2601_v18, %v2597_v9  ;;  %v1067_v47 = vld [vmem:[#allocation2 + $0x40] sm:$0xff]  ;;  %v2653_v10 = vsel %vm4774_vm9, %v2581_v35, %v2652_v7 }
  0xea   : > { %v1334_v54 = vpop.permute.xlu1 %1333  ;;  %v1332_v0 = vpop.permute.xlu0 %1331  ;;  %v2661_v5 = vld [vmem:[#allocation2 + $0xe8] sm:$0xff]  ;;  %2633 = vst [vmem:[#allocation2 + $0x48] sm:$0xff] %v2632_v59  ;;  %2654 = vst [vmem:[#allocation2 + $0xb8] sm:$0xff] %v2653_v10  ;;  %v1073_v60 = vld [vmem:[#allocation2 + $0x60] sm:$0xff] }
  0xeb   : > { %v1387_v45 = vsel %vm4752_vm8, %v1334_v54, %v1065_v50  ;;  %v1384_v55 = vsel %vm4752_vm8, %v1332_v0, %v1062_v41  ;;  %v2595_v50 = vor.u32 %v2594_v20, %v2590_v24  ;;  %v2644_v41 = vsel %vm4774_vm9, %v4770_v44, %v2643_v40  ;;  %v3791_v33 = vld [vmem:[%s4123_s8 + $0x38] sm:$0xff]   ;;  %v1088_v40 = vld [vmem:[#allocation2 + $0xb0] sm:$0xff] }
  0xec   : > { %1388 = vst [vmem:[#allocation2 + $0x30] sm:$0xff] %v1387_v45  ;;  %2161 = vrot.lane.b32.xlu1 %v4688_v25, %s3967_s5  ;;  %1385 = vst [vmem:[#allocation2 + $0x20] sm:$0xff] %v1384_v55  ;;  %2159 = vrot.lane.b32.xlu0 %v4690_v48, %s3967_s5  ;;  %v2638_v25 = vsel %vm4774_vm9, %v4766_v26, %v2637_v19  ;;  %v2647_v48 = vsel %vm4774_vm9, %v4785_v53, %v2646_v11  ;;  %v1079_v19 = vld [vmem:[#allocation2 + $0x80] sm:$0xff]  ;;  %v1094_v7 = vld [vmem:[#allocation2 + $0xd0] sm:$0xff] }
  0xed   : > { %2639 = vst [vmem:[#allocation2 + $0x68] sm:$0xff] %v2638_v25  ;;  %2645 = vst [vmem:[#allocation2 + $0x88] sm:$0xff] %v2644_v41  ;;  %v2650_v26 = vsel %vm4774_vm9, %v4792_v14, %v2649_v32  ;;  %v2656_v44 = vsel %vm4774_vm9, %v2588_v16, %v2655_v49  ;;  %v1068_v24 = vsel %vm4633_vm6, %v4628_v34, %v1067_v47  ;;  %v1085_v11 = vld [vmem:[#allocation2 + $0xa0] sm:$0xff]  ;;  %v3793_v32 = vld [vmem:[%s4123_s8 + $0x48] sm:$0xff]  }
  0xee   : > { %v1338_v23 = vpop.permute.xlu1 %1337  ;;  %v1336_v14 = vpop.permute.xlu0 %1335  ;;  %2648 = vst [vmem:[#allocation2 + $0x98] sm:$0xff] %v2647_v48  ;;  %2651 = vst [vmem:[#allocation2 + $0xa8] sm:$0xff] %v2650_v26  ;;  %v2659_v12 = vsel %vm4774_vm9, %v2595_v50, %v2658_v63  ;;  %v2662_v34 = vsel %vm4774_vm9, %v2602_v52, %v2661_v5  ;;  %v1074_v9 = vsel %vm4633_vm6, %v4647_v8, %v1073_v60  ;;  %v1091_v49 = vld [vmem:[#allocation2 + $0xc0] sm:$0xff]  ;;  %v3795_v63 = vld [vmem:[%s4123_s8 + $0x58] sm:$0xff]  }
  0xef   : > { %v1393_v53 = vsel %vm4752_vm8, %v1338_v23, %v1071_v42  ;;  %2657 = vst [vmem:[#allocation2 + $0xc8] sm:$0xff] %v2656_v44  ;;  %v1390_v28 = vsel %vm4752_vm8, %v1336_v14, %v1068_v24  ;;  %2660 = vst [vmem:[#allocation2 + $0xd8] sm:$0xff] %v2659_v12  ;;  %v3788_v42 = vld [vmem:[%s4123_s8 + $0x10] sm:$0xff]   ;;  %v1083_v8 = vsel %vm4633_vm6, %v4657_v43, %v1082_v21  ;;  %v1097_v52 = vld [vmem:[#allocation2 + $0xe0] sm:$0xff] }
  0xf0   : > { %1394 = vst [vmem:[#allocation2 + $0x50] sm:$0xff] %v1393_v53  ;;  %2332 = vrot.lane.b32.xlu1 %v3785_v3, %s3968_s6  ;;  %2663 = vst [vmem:[#allocation2 + $0xe8] sm:$0xff] %v2662_v34  ;;  %2163 = vrot.lane.b32.xlu0 %v4692_v51, %s3967_s5  ;;  %v3789_v51 = vld [vmem:[%s4123_s8 + $0x28] sm:$0xff]   ;;  %v1080_v35 = vsel %vm4633_vm6, %v4659_v4, %v1079_v19  ;;  %v3792_v43 = vld [vmem:[%s4123_s8 + $0x30] sm:$0xff]   ;;  %v1089_v4 = vsel %vm4633_vm6, %v4686_v6, %v1088_v40 }
  0xf1   : > { %1391 = vst [vmem:[#allocation2 + $0x40] sm:$0xff] %v1390_v28  ;;  %v1086_v0 = vsel %vm4633_vm6, %v4699_v37, %v1085_v11  ;;  %v3794_v6 = vld [vmem:[%s4123_s8 + $0x40] sm:$0xff]   ;;  %v1095_v37 = vsel %vm4633_vm6, %v4715_v29, %v1094_v7  ;;  %v1092_v3 = vsel %vm4633_vm6, %v4726_v62, %v1091_v49  ;;  %v1100_v5 = vld [vmem:[#allocation2 + $0xf0] sm:$0xff]  ;;  %v1098_v15 = vsel %vm4633_vm6, %v4745_v2, %v1097_v52  ;;  %v3799_v26 = vld [vmem:[%s4123_s8 + $0x78] sm:$0xff]  }
  0xf2   : > { %v1342_v57 = vpop.permute.xlu1 %1341  ;;  %v1340_v17 = vpop.permute.xlu0 %1339  ;;  %v3796_v29 = vld [vmem:[%s4123_s8 + $0x50] sm:$0xff]   ;;  %v1101_v62 = vsel %vm4633_vm6, %v4738_v36, %v1100_v5  ;;  %v3797_v36 = vld [vmem:[%s4123_s8 + $0x68] sm:$0xff]   ;;  %v3798_v48 = vld [vmem:[%s4123_s8 + $0x60] sm:$0xff]  }
  0xf3   : > { %v1399_v13 = vsel %vm4752_vm8, %v1342_v57, %v1077_v31  ;;  %v1396_v61 = vsel %vm4752_vm8, %v1340_v17, %v1074_v9 }
  0xf4   : > { %1400 = vst [vmem:[#allocation2 + $0x70] sm:$0xff] %v1399_v13  ;;  %2336 = vrot.lane.b32.xlu1 %v3787_v22, %s3968_s6  ;;  %1397 = vst [vmem:[#allocation2 + $0x60] sm:$0xff] %v1396_v61  ;;  %2334 = vrot.lane.b32.xlu0 %v3788_v42, %s3968_s6 }
  0xf6   : > { %v1346_v54 = vpop.permute.xlu1 %1345  ;;  %v1344_v30 = vpop.permute.xlu0 %1343 }
  0xf7   : > { %v1405_v20 = vsel %vm4752_vm8, %v1346_v54, %v1083_v8  ;;  %v1402_v27 = vsel %vm4752_vm8, %v1344_v30, %v1080_v35 }
  0xf8   : > { %1406 = vst [vmem:[#allocation2 + $0x90] sm:$0xff] %v1405_v20  ;;  %2340 = vrot.lane.b32.xlu1 %v3789_v51, %s3968_s6  ;;  %1403 = vst [vmem:[#allocation2 + $0x80] sm:$0xff] %v1402_v27  ;;  %2338 = vrot.lane.b32.xlu0 %v3790_v1, %s3968_s6 }
  0xfa   : > { %v1350_v45 = vpop.permute.xlu1 %1349  ;;  %v1348_v18 = vpop.permute.xlu0 %1347 }
  0xfb   : > { %v1411_v16 = vsel %vm4752_vm8, %v1350_v45, %v1089_v4  ;;  %v1408_v58 = vsel %vm4752_vm8, %v1348_v18, %v1086_v0 }
  0xfc   : > { %1412 = vst [vmem:[#allocation2 + $0xb0] sm:$0xff] %v1411_v16  ;;  %2344 = vrot.lane.b32.xlu1 %v3791_v33, %s3968_s6  ;;  %1409 = vst [vmem:[#allocation2 + $0xa0] sm:$0xff] %v1408_v58  ;;  %2342 = vrot.lane.b32.xlu0 %v3792_v43, %s3968_s6 }
  0xfe   : > { %v1354_v55 = vpop.permute.xlu1 %1353  ;;  %v1352_v59 = vpop.permute.xlu0 %1351 }
  0xff   : > { %v1417_v50 = vsel %vm4752_vm8, %v1354_v55, %v1095_v37  ;;  %v1414_v46 = vsel %vm4752_vm8, %v1352_v59, %v1092_v3 }
 0x100   : > { %1418 = vst [vmem:[#allocation2 + $0xd0] sm:$0xff] %v1417_v50  ;;  %2348 = vrot.lane.b32.xlu1 %v3793_v32, %s3968_s6  ;;  %1415 = vst [vmem:[#allocation2 + $0xc0] sm:$0xff] %v1414_v46  ;;  %2346 = vrot.lane.b32.xlu0 %v3794_v6, %s3968_s6 }
 0x102   : > { %v1358_v25 = vpop.permute.xlu1 %1357  ;;  %v1356_v47 = vpop.permute.xlu0 %1355 }
 0x103   : > { %v1423_v41 = vsel %vm4752_vm8, %v1358_v25, %v1101_v62  ;;  %v1420_v23 = vsel %vm4752_vm8, %v1356_v47, %v1098_v15 }
 0x104   : > { %1424 = vst [vmem:[#allocation2 + $0xf0] sm:$0xff] %v1423_v41  ;;  %2352 = vrot.lane.b32.xlu1 %v3795_v63, %s3968_s6  ;;  %1421 = vst [vmem:[#allocation2 + $0xe0] sm:$0xff] %v1420_v23  ;;  %2350 = vrot.lane.b32.xlu0 %v3796_v29, %s3968_s6 }
 0x106   : > { %v1540_v56 = vpop.permute.xlu1 %1539  ;;  %v1538_v2 = vpop.permute.xlu0 %1537 }
 0x107   : > { %1587 = vst.msk [vmem:[#allocation2 + $0x10] sm:$0xff] %vm1585_vm10, %v1540_v56  ;;  %1586 = vst.msk [vmem:[#allocation2] sm:$0xff] %vm1585_vm10, %v1538_v2 }
 0x108   : > { %2356 = vrot.lane.b32.xlu1 %v3797_v36, %s3968_s6  ;;  %2354 = vrot.lane.b32.xlu0 %v3798_v48, %s3968_s6 }
 0x10a   : > { %v1544_v10 = vpop.permute.xlu1 %1543  ;;  %v1542_v44 = vpop.permute.xlu0 %1541 }
 0x10b   : > { %1589 = vst.msk [vmem:[#allocation2 + $0x30] sm:$0xff] %vm1585_vm10, %v1544_v10  ;;  %1588 = vst.msk [vmem:[#allocation2 + $0x20] sm:$0xff] %vm1585_vm10, %v1542_v44 }
 0x10c   : > { %2360 = vrot.lane.b32.xlu1 %v3799_v26, %s3968_s6  ;;  %2358 = vrot.lane.b32.xlu0 %v3800_v38, %s3968_s6 }
 0x10e   : > { %v1548_v24 = vpop.permute.xlu1 %1547  ;;  %v1546_v53 = vpop.permute.xlu0 %1545  ;;  %v1879_v0 = vld [vmem:[#allocation2 + $0x10] sm:$0xff]  ;;  %v1876_v18 = vld [vmem:[#allocation2] sm:$0xff] }
 0x10f   : > { %1591 = vst.msk [vmem:[#allocation2 + $0x50] sm:$0xff] %vm1585_vm10, %v1548_v24  ;;  %1590 = vst.msk [vmem:[#allocation2 + $0x40] sm:$0xff] %vm1585_vm10, %v1546_v53 }
 0x112   : > { %v1552_v14 = vpop.permute.xlu1 %1551  ;;  %v1550_v12 = vpop.permute.xlu0 %1549  ;;  %v1885_v49 = vld [vmem:[#allocation2 + $0x30] sm:$0xff]  ;;  %v1882_v3 = vld [vmem:[#allocation2 + $0x20] sm:$0xff] }
 0x113   : > { %1593 = vst.msk [vmem:[#allocation2 + $0x70] sm:$0xff] %vm1585_vm10, %v1552_v14  ;;  %1592 = vst.msk [vmem:[#allocation2 + $0x60] sm:$0xff] %vm1585_vm10, %v1550_v12 }
 0x116   : > { %v1556_v34 = vpop.permute.xlu1 %1555  ;;  %v1554_v28 = vpop.permute.xlu0 %1553  ;;  %v1891_v29 = vld [vmem:[#allocation2 + $0x50] sm:$0xff]  ;;  %v1888_v52 = vld [vmem:[#allocation2 + $0x40] sm:$0xff] }
 0x117   : > { %1595 = vst.msk [vmem:[#allocation2 + $0x90] sm:$0xff] %vm1585_vm10, %v1556_v34  ;;  %1594 = vst.msk [vmem:[#allocation2 + $0x80] sm:$0xff] %vm1585_vm10, %v1554_v28 }
 0x11a   : > { %v1560_v22 = vpop.permute.xlu1 %1559  ;;  %v1558_v39 = vpop.permute.xlu0 %1557  ;;  %v1897_v36 = vld [vmem:[#allocation2 + $0x70] sm:$0xff]  ;;  %v1894_v56 = vld [vmem:[#allocation2 + $0x60] sm:$0xff] }
 0x11b   : > { %1597 = vst.msk [vmem:[#allocation2 + $0xb0] sm:$0xff] %vm1585_vm10, %v1560_v22  ;;  %1596 = vst.msk [vmem:[#allocation2 + $0xa0] sm:$0xff] %vm1585_vm10, %v1558_v39 }
 0x11e   : > { %v1564_v42 = vpop.permute.xlu1 %1563  ;;  %v1562_v31 = vpop.permute.xlu0 %1561  ;;  %v1903_v24 = vld [vmem:[#allocation2 + $0x90] sm:$0xff]  ;;  %v1900_v14 = vld [vmem:[#allocation2 + $0x80] sm:$0xff] }
 0x11f   : > { %1599 = vst.msk [vmem:[#allocation2 + $0xd0] sm:$0xff] %vm1585_vm10, %v1564_v42  ;;  %1598 = vst.msk [vmem:[#allocation2 + $0xc0] sm:$0xff] %vm1585_vm10, %v1562_v31 }
 0x122   : > { %v1568_v60 = vpop.permute.xlu1 %1567  ;;  %v1566_v57 = vpop.permute.xlu0 %1565  ;;  %v1909_v42 = vld [vmem:[#allocation2 + $0xb0] sm:$0xff] }
 0x123   : > { %1601 = vst.msk [vmem:[#allocation2 + $0xf0] sm:$0xff] %vm1585_vm10, %v1568_v60  ;;  %1600 = vst.msk [vmem:[#allocation2 + $0xe0] sm:$0xff] %vm1585_vm10, %v1566_v57  ;;  %v1906_v60 = vld [vmem:[#allocation2 + $0xa0] sm:$0xff] }
 0x126   : > { %v1829_v9 = vpop.permute.xlu1 %1828  ;;  %v1827_v13 = vpop.permute.xlu0 %1826 }
 0x127   : > { %v1880_v16 = vsel %vm4979_vm13, %v1829_v9, %v1879_v0  ;;  %v1877_v32 = vsel %vm4979_vm13, %v1827_v13, %v1876_v18 }
 0x12a   : > { %v1833_v17 = vpop.permute.xlu1 %1832  ;;  %v1831_v61 = vpop.permute.xlu0 %1830  ;;  %v1921_v43 = vld [vmem:[#allocation2 + $0xf0] sm:$0xff] }
 0x12b   : > { %v1886_v55 = vsel %vm4979_vm13, %v1833_v17, %v1885_v49  ;;  %v1883_v59 = vsel %vm4979_vm13, %v1831_v61, %v1882_v3 }
 0x12e   : > { %v1837_v51 = vpop.permute.xlu1 %1836  ;;  %v1835_v21 = vpop.permute.xlu0 %1834 }
 0x12f   : > { %v1892_v62 = vsel %vm4979_vm13, %v1837_v51, %v1891_v29  ;;  %v1889_v15 = vsel %vm4979_vm13, %v1835_v21, %v1888_v52  ;;  %v1915_v51 = vld [vmem:[#allocation2 + $0xd0] sm:$0xff] }
 0x132   : > { %v1841_v1 = vpop.permute.xlu1 %1840  ;;  %v1839_v8 = vpop.permute.xlu0 %1838 }
 0x133   : > { %v1898_v48 = vsel %vm4979_vm13, %v1841_v1, %v1897_v36  ;;  %v1895_v26 = vsel %vm4979_vm13, %v1839_v8, %v1894_v56  ;;  %v1912_v1 = vld [vmem:[#allocation2 + $0xc0] sm:$0xff] }
 0x136   : > { %v1845_v19 = vpop.permute.xlu1 %1844  ;;  %v4968_v54 = vpop.permute.xlu0 %1842 }
 0x137   : > { %v1904_v53 = vsel %vm4979_vm13, %v1845_v19, %v1903_v24  ;;  %v1901_v34 = vsel %vm4979_vm13, %v4968_v54, %v1900_v14 }
 0x13a   : > { %v4970_v35 = vpop.permute.xlu1 %1848  ;;  %v4972_v20 = vpop.permute.xlu0 %1846 }
 0x13b   : > { %v1910_v31 = vsel %vm4979_vm13, %v4970_v35, %v1909_v42  ;;  %v1907_v9 = vsel %vm4979_vm13, %v4972_v20, %v1906_v60 }
 0x13e   : > { %v4974_v30 = vpop.permute.xlu1 %1852  ;;  %v4976_v27 = vpop.permute.xlu0 %1850 }
 0x13f   : > { %v1916_v21 = vsel %vm4979_vm13, %v4974_v30, %v1915_v51  ;;  %v1913_v19 = vsel %vm4979_vm13, %v4976_v27, %v1912_v1 }
 0x142   : > { %v1857_v40 = vpop.permute.xlu1 %1856  ;;  %v4985_v11 = vpop.permute.xlu0 %1854 }
 0x143   : > { %v1922_v4 = vsel %vm4979_vm13, %v1857_v40, %v1921_v43  ;;  %v1918_v40 = vld [vmem:[#allocation2 + $0xe0] sm:$0xff] }
 0x144   : > { %1923 = vst [vmem:[#allocation2 + $0xf0] sm:$0xff] %v1922_v4  ;;  %v1919_v30 = vsel %vm4979_vm13, %v4985_v11, %v1918_v40 }
 0x146   : > { %v2138_v58 = vpop.permute.xlu1 %2137  ;;  %v2136_v6 = vpop.permute.xlu0 %2135 }
 0x147   : > { %v2186_v7 = vsel %vm4988_vm14, %v2138_v58, %v1880_v16  ;;  %v2183_v37 = vsel %vm4988_vm14, %v2136_v6, %v1877_v32 }
 0x148   : > { %2187 = vst [vmem:[#allocation2 + $0x10] sm:$0xff] %v2186_v7  ;;  %2184 = vst [vmem:[#allocation2] sm:$0xff] %v2183_v37 }
 0x14a   : > { %v2142_v50 = vpop.permute.xlu1 %2141  ;;  %v2140_v63 = vpop.permute.xlu0 %2139 }
 0x14b   : > { %v2192_v46 = vsel %vm4988_vm14, %v2142_v50, %v1886_v55  ;;  %v2189_v5 = vsel %vm4988_vm14, %v2140_v63, %v1883_v59 }
 0x14c   : > { %2193 = vst [vmem:[#allocation2 + $0x30] sm:$0xff] %v2192_v46  ;;  %2190 = vst [vmem:[#allocation2 + $0x20] sm:$0xff] %v2189_v5 }
 0x14e   : > { %v2146_v25 = vpop.permute.xlu1 %2145  ;;  %v2144_v47 = vpop.permute.xlu0 %2143 }
 0x14f   : > { %v2198_v41 = vsel %vm4988_vm14, %v2146_v25, %v1892_v62  ;;  %v2195_v23 = vsel %vm4988_vm14, %v2144_v47, %v1889_v15 }
 0x150   : > { %2199 = vst [vmem:[#allocation2 + $0x50] sm:$0xff] %v2198_v41  ;;  %2196 = vst [vmem:[#allocation2 + $0x40] sm:$0xff] %v2195_v23 }
 0x152   : > { %v2150_v2 = vpop.permute.xlu1 %2149  ;;  %v2148_v10 = vpop.permute.xlu0 %2147 }
 0x153   : > { %v2204_v38 = vsel %vm4988_vm14, %v2150_v2, %v1898_v48  ;;  %v2201_v44 = vsel %vm4988_vm14, %v2148_v10, %v1895_v26 }
 0x154   : > { %2205 = vst [vmem:[#allocation2 + $0x70] sm:$0xff] %v2204_v38  ;;  %2202 = vst [vmem:[#allocation2 + $0x60] sm:$0xff] %v2201_v44 }
 0x156   : > { %v2154_v12 = vpop.permute.xlu1 %2153  ;;  %v2152_v22 = vpop.permute.xlu0 %2151 }
 0x157   : > { %v2210_v28 = vsel %vm4988_vm14, %v2154_v12, %v1904_v53  ;;  %v2207_v39 = vsel %vm4988_vm14, %v2152_v22, %v1901_v34 }
 0x158   : > { %2211 = vst [vmem:[#allocation2 + $0x90] sm:$0xff] %v2210_v28  ;;  %2208 = vst [vmem:[#allocation2 + $0x80] sm:$0xff] %v2207_v39 }
 0x15a   : > { %v2158_v57 = vpop.permute.xlu1 %2157  ;;  %v2156_v17 = vpop.permute.xlu0 %2155 }
 0x15b   : > { %v2216_v13 = vsel %vm4988_vm14, %v2158_v57, %v1910_v31  ;;  %v2213_v61 = vsel %vm4988_vm14, %v2156_v17, %v1907_v9 }
 0x15c   : > { %2217 = vst [vmem:[#allocation2 + $0xb0] sm:$0xff] %v2216_v13  ;;  %2214 = vst [vmem:[#allocation2 + $0xa0] sm:$0xff] %v2213_v61 }
 0x15e   : > { %v2162_v8 = vpop.permute.xlu1 %2161  ;;  %v2160_v35 = vpop.permute.xlu0 %2159 }
 0x15f   : > { %v2222_v54 = vsel %vm4988_vm14, %v2162_v8, %v1916_v21  ;;  %v2219_v20 = vsel %vm4988_vm14, %v2160_v35, %v1913_v19 }
 0x160   : > { %2223 = vst [vmem:[#allocation2 + $0xd0] sm:$0xff] %v2222_v54  ;;  %2220 = vst [vmem:[#allocation2 + $0xc0] sm:$0xff] %v2219_v20 }
 0x162   : > { %v2333_v43 = vpop.permute.xlu1 %2332  ;;  %v2164_v4 = vpop.permute.xlu0 %2163 }
 0x163   : > { %2378 = vst.msk [vmem:[#allocation2] sm:$0xff] %vm2377_vm15, %v2333_v43  ;;  %v2225_v27 = vsel %vm4988_vm14, %v2164_v4, %v1919_v30 }
 0x164   : > { %2226 = vst [vmem:[#allocation2 + $0xe0] sm:$0xff] %v2225_v27 }
 0x166   : > { %v2337_v0 = vpop.permute.xlu1 %2336  ;;  %v2335_v16 = vpop.permute.xlu0 %2334 }
 0x167   : > { %2380 = vst.msk [vmem:[#allocation2 + $0x20] sm:$0xff] %vm2377_vm15, %v2337_v0  ;;  %2379 = vst.msk [vmem:[#allocation2 + $0x10] sm:$0xff] %vm2377_vm15, %v2335_v16 }
 0x16a   : > { %v2341_v18 = vpop.permute.xlu1 %2340  ;;  %v2339_v58 = vpop.permute.xlu0 %2338 }
 0x16b   : > { %2382 = vst.msk [vmem:[#allocation2 + $0x40] sm:$0xff] %vm2377_vm15, %v2341_v18  ;;  %2381 = vst.msk [vmem:[#allocation2 + $0x30] sm:$0xff] %vm2377_vm15, %v2339_v58 }
 0x16e   : > { %v2345_v33 = vpop.permute.xlu1 %2344  ;;  %v2343_v11 = vpop.permute.xlu0 %2342 }
 0x16f   : > { %2384 = vst.msk [vmem:[#allocation2 + $0x60] sm:$0xff] %vm2377_vm15, %v2345_v33  ;;  %2383 = vst.msk [vmem:[#allocation2 + $0x50] sm:$0xff] %vm2377_vm15, %v2343_v11 }
 0x172   : > { %v2349_v45 = vpop.permute.xlu1 %2348  ;;  %v2347_v32 = vpop.permute.xlu0 %2346 }
 0x173   : > { %2386 = vst.msk [vmem:[#allocation2 + $0x80] sm:$0xff] %vm2377_vm15, %v2349_v45  ;;  %2385 = vst.msk [vmem:[#allocation2 + $0x70] sm:$0xff] %vm2377_vm15, %v2347_v32 }
 0x176   : > { %v2353_v7 = vpop.permute.xlu1 %2352  ;;  %v2351_v6 = vpop.permute.xlu0 %2350 }
 0x177   : > { %2388 = vst.msk [vmem:[#allocation2 + $0xa0] sm:$0xff] %vm2377_vm15, %v2353_v7  ;;  %2387 = vst.msk [vmem:[#allocation2 + $0x90] sm:$0xff] %vm2377_vm15, %v2351_v6 }
 0x17a   : > { %v2357_v37 = vpop.permute.xlu1 %2356  ;;  %v2355_v49 = vpop.permute.xlu0 %2354 }
 0x17b   : > { %2390 = vst.msk [vmem:[#allocation2 + $0xc0] sm:$0xff] %vm2377_vm15, %v2357_v37  ;;  %2389 = vst.msk [vmem:[#allocation2 + $0xb0] sm:$0xff] %vm2377_vm15, %v2355_v49 }
 0x17e   : > { %v2361_v55 = vpop.permute.xlu1 %2360  ;;  %v2359_v3 = vpop.permute.xlu0 %2358 }
 0x17f   : > { %2392 = vst.msk [vmem:[#allocation2 + $0xe0] sm:$0xff] %vm2377_vm15, %v2361_v55  ;;  %2391 = vst.msk [vmem:[#allocation2 + $0xd0] sm:$0xff] %vm2377_vm15, %v2359_v3 }
 0x180 PF: > { %v3816_v50 = vld [vmem:[%s4129_s14] sm:$0xff]   ;;  %v3969_v59 = vmov 0   ;;  %v3817_v46 = vld [vmem:[%s4129_s14 + $0x8] sm:$0xff]   ;;  %v3818_v63 = vld [vmem:[%s4129_s14 + $0x10] sm:$0xff]   ;;  %vm2775_vm0 = vcmask 130048   ;;  %s3572_s29 = sshll.u32 (%p4057_p9), %s3947_s17, 6 }
 0x181   : > { %2824 = vmatprep.subr.bf16.mxu0 %v3969_v59  ;;  %3577 = vmatprep.subr.bf16.mxu1 %v3969_v59  ;;  %v2665_v5 = vld [vmem:[#allocation2 + $0x8] sm:$0xff]  ;;  %v3819_v62 = vld [vmem:[%s4129_s14 + $0x18] sm:$0xff]   ;;  %v3822_v15 = vld [vmem:[%s4129_s14 + $0x30] sm:$0xff]   ;;  %s3057_s30 = sadd.s32 (%p4057_p9), %s3943_s16, %s3572_s29 }
 0x182   : > { %2825 = vmatpush1.bf16.msra.mxu0 %v3816_v50  ;;  %3586 = vmatpush1.bf16.msra.mxu1 %v3816_v50  ;;  %v3820_v52 = vld [vmem:[%s4129_s14 + $0x20] sm:$0xff]   ;;  %v3821_v25 = vld [vmem:[%s4129_s14 + $0x28] sm:$0xff]   ;;  %v3823_v41 = vld [vmem:[%s4129_s14 + $0x38] sm:$0xff]   ;;  %s3573_s9 = sshll.u32 (%p4057_p9), %s3057_s30, 3 }
 0x183   : > { %2826 = vmatprep.subr.bf16.mxu0 %v3969_v59  ;;  %3578 = vmatprep.subr.bf16.mxu1 %v3969_v59  ;;  %v3824_v47 = vld [vmem:[%s4129_s14 + $0x40] sm:$0xff]   ;;  %v2667_v48 = vld [vmem:[#allocation2 + $0x18] sm:$0xff]  ;;  %v2666_v2 = vld [vmem:[#allocation2 + $0x10] sm:$0xff]  ;;  %s5185_s14 = scalar_lea.vmem (%p4057_p9), %s5272_s3, %s3573_s9 }
 0x184   : > { %3555 = vmatprep.mubr.msk.bf16.mxu0 %vm2775_vm0, %v2665_v5  ;;  %v2664_v23 = vld [vmem:[#allocation2] sm:$0xff]  ;;  %v2682_v26 = vld [vmem:[#allocation2 + $0x90] sm:$0xff]  ;;  %v2669_v38 = vld [vmem:[#allocation2 + $0x28] sm:$0xff] }
 0x185   : > { %v2681_v29 = vld [vmem:[#allocation2 + $0x88] sm:$0xff]  ;;  %v2680_v36 = vld [vmem:[#allocation2 + $0x80] sm:$0xff]  ;;  %v2671_v53 = vld [vmem:[#allocation2 + $0x38] sm:$0xff] }
 0x186   : > { %2827 = vmatpush1.bf16.msra.mxu0 %v3817_v46  ;;  %3587 = vmatpush1.bf16.msra.mxu1 %v3817_v46  ;;  %v2683_v56 = vld [vmem:[#allocation2 + $0x98] sm:$0xff]  ;;  %v2685_v10 = vld [vmem:[#allocation2 + $0xa8] sm:$0xff]  ;;  %v2668_v44 = vld [vmem:[#allocation2 + $0x20] sm:$0xff] }
 0x187   : > { %2828 = vmatprep.subr.bf16.mxu0 %v3969_v59  ;;  %3579 = vmatprep.subr.bf16.mxu1 %v3969_v59  ;;  %v2684_v24 = vld [vmem:[#allocation2 + $0xa0] sm:$0xff]  ;;  %v2687_v14 = vld [vmem:[#allocation2 + $0xb8] sm:$0xff]  ;;  %v2670_v12 = vld [vmem:[#allocation2 + $0x30] sm:$0xff] }
 0x188   : > { %3563 = vmatprep.mubr.msk.bf16.mxu1 %vm2775_vm0, %v2681_v29  ;;  %v2686_v34 = vld [vmem:[#allocation2 + $0xb0] sm:$0xff]  ;;  %v2673_v28 = vld [vmem:[#allocation2 + $0x48] sm:$0xff]  ;;  %v2672_v39 = vld [vmem:[#allocation2 + $0x40] sm:$0xff] }
 0x189   : > { %v2689_v22 = vld [vmem:[#allocation2 + $0xc8] sm:$0xff]  ;;  %v2688_v42 = vld [vmem:[#allocation2 + $0xc0] sm:$0xff]  ;;  %v2675_v31 = vld [vmem:[#allocation2 + $0x58] sm:$0xff] }
 0x18a   : > { %2829 = vmatpush1.bf16.msra.mxu0 %v3818_v63  ;;  %3588 = vmatpush1.bf16.msra.mxu1 %v3818_v63  ;;  %v2691_v60 = vld [vmem:[#allocation2 + $0xd8] sm:$0xff]  ;;  %v2674_v57 = vld [vmem:[#allocation2 + $0x50] sm:$0xff]  ;;  %v2677_v13 = vld [vmem:[#allocation2 + $0x68] sm:$0xff] }
 0x18b   : > { %2830 = vmatprep.subr.bf16.mxu0 %v3969_v59  ;;  %3580 = vmatprep.subr.bf16.mxu1 %v3969_v59  ;;  %v2690_v9 = vld [vmem:[#allocation2 + $0xd0] sm:$0xff]  ;;  %v2693_v17 = vld [vmem:[#allocation2 + $0xe8] sm:$0xff]  ;;  %v2676_v61 = vld [vmem:[#allocation2 + $0x60] sm:$0xff] }
 0x18c   : > { %v2692_v51 = vld [vmem:[#allocation2 + $0xe0] sm:$0xff]  ;;  %v2679_v21 = vld [vmem:[#allocation2 + $0x78] sm:$0xff]  ;;  %v2678_v8 = vld [vmem:[#allocation2 + $0x70] sm:$0xff] }
 0x18d   : > { %v2695_v1 = vld [vmem:[#allocation2 + $0xf8] sm:$0xff]  ;;  %v2694_v19 = vld [vmem:[#allocation2 + $0xf0] sm:$0xff]  ;;  %v5103_v54 = vld [vmem:[%s321_s11] ss:$0 sm:$0xff] }
 0x18e   : > { %2831 = vmatpush1.bf16.msra.mxu0 %v3819_v62  ;;  %3589 = vmatpush1.bf16.msra.mxu1 %v3819_v62 }
 0x18f   : > { %2832 = vmatprep.subr.bf16.mxu0 %v3969_v59  ;;  %3581 = vmatprep.subr.bf16.mxu1 %v3969_v59 }
 0x192   : > { %2833 = vmatpush1.bf16.msra.mxu0 %v3820_v52  ;;  %3590 = vmatpush1.bf16.msra.mxu1 %v3820_v52 }
 0x193   : > { %2834 = vmatprep.subr.bf16.mxu0 %v3969_v59  ;;  %3582 = vmatprep.subr.bf16.mxu1 %v3969_v59 }
 0x196   : > { %2835 = vmatpush1.bf16.msra.mxu0 %v3821_v25  ;;  %3591 = vmatpush1.bf16.msra.mxu1 %v3821_v25 }
 0x197   : > { %2836 = vmatprep.subr.bf16.mxu0 %v3969_v59  ;;  %3583 = vmatprep.subr.bf16.mxu1 %v3969_v59 }
 0x19a   : > { %2837 = vmatpush1.bf16.msra.mxu0 %v3822_v15  ;;  %3592 = vmatpush1.bf16.msra.mxu1 %v3822_v15 }
 0x19b   : > { %2838 = vmatprep.subr.bf16.mxu0 %v3969_v59  ;;  %3584 = vmatprep.subr.bf16.mxu1 %v3969_v59 }
 0x19e   : > { %2839 = vmatpush1.bf16.msra.mxu0 %v3823_v41  ;;  %3593 = vmatpush1.bf16.msra.mxu1 %v3823_v41 }
 0x19f   : > { %2840 = vmatprep.subr.bf16.mxu0 %v3969_v59  ;;  %3585 = vmatprep.subr.bf16.mxu1 %v3969_v59 }
 0x1a2   : > { %2841 = vmatpush1.bf16.msra.mxu0 %v3824_v47  ;;  %3594 = vmatpush1.bf16.msra.mxu1 %v3824_v47 }
 0x1a5   : > { %2857 = vmatmul.mubr.bf16.vlgmr.msra.gmra.mrb[0].mxu0 %v2664_v23  ;;  %2921 = vmatmul.mubr.bf16.vlgmr.msra.gmra.mrb[0].mxu1 %v2680_v36 }
 0x1a6   : > { %3556 = vmatprep.mubr.msk.bf16.mxu0 %vm2775_vm0, %v2667_v48  ;;  %3564 = vmatprep.mubr.msk.bf16.mxu1 %vm2775_vm0, %v2683_v56 }
 0x1ad   : > { %2865 = vmatmul.mubr.bf16.gmra.mrb[4].mxu0 %v2666_v2  ;;  %2929 = vmatmul.mubr.bf16.gmra.mrb[4].mxu1 %v2682_v26 }
 0x1ae   : > { %3557 = vmatprep.mubr.msk.bf16.mxu0 %vm2775_vm0, %v2669_v38  ;;  %3565 = vmatprep.mubr.msk.bf16.mxu1 %vm2775_vm0, %v2685_v10 }
 0x1b5   : > { %2873 = vmatmul.mubr.bf16.gmra.mrb[8].mxu0 %v2668_v44  ;;  %2937 = vmatmul.mubr.bf16.gmra.mrb[8].mxu1 %v2684_v24 }
 0x1b6   : > { %3558 = vmatprep.mubr.msk.bf16.mxu0 %vm2775_vm0, %v2671_v53  ;;  %3566 = vmatprep.mubr.msk.bf16.mxu1 %vm2775_vm0, %v2687_v14 }
 0x1bd   : > { %2881 = vmatmul.mubr.bf16.gmra.mrb[12].mxu0 %v2670_v12  ;;  %2945 = vmatmul.mubr.bf16.gmra.mrb[12].mxu1 %v2686_v34 }
 0x1be   : > { %3559 = vmatprep.mubr.msk.bf16.mxu0 %vm2775_vm0, %v2673_v28  ;;  %3567 = vmatprep.mubr.msk.bf16.mxu1 %vm2775_vm0, %v2689_v22 }
 0x1c5   : > { %2889 = vmatmul.mubr.bf16.gmra.mrb[16].mxu0 %v2672_v39  ;;  %2953 = vmatmul.mubr.bf16.gmra.mrb[16].mxu1 %v2688_v42 }
 0x1c6   : > { %3560 = vmatprep.mubr.msk.bf16.mxu0 %vm2775_vm0, %v2675_v31  ;;  %3568 = vmatprep.mubr.msk.bf16.mxu1 %vm2775_vm0, %v2691_v60 }
 0x1cd   : > { %2897 = vmatmul.mubr.bf16.gmra.mrb[20].mxu0 %v2674_v57  ;;  %2961 = vmatmul.mubr.bf16.gmra.mrb[20].mxu1 %v2690_v9 }
 0x1ce   : > { %3561 = vmatprep.mubr.msk.bf16.mxu0 %vm2775_vm0, %v2677_v13  ;;  %3569 = vmatprep.mubr.msk.bf16.mxu1 %vm2775_vm0, %v2693_v17 }
 0x1d5   : > { %2905 = vmatmul.mubr.bf16.gmra.mrb[24].mxu0 %v2676_v61  ;;  %2969 = vmatmul.mubr.bf16.gmra.mrb[24].mxu1 %v2692_v51 }
 0x1d6   : > { %3562 = vmatprep.mubr.msk.bf16.mxu0 %vm2775_vm0, %v2679_v21  ;;  %3570 = vmatprep.mubr.msk.bf16.mxu1 %vm2775_vm0, %v2695_v1 }
 0x1dd   : > { %2913 = vmatmul.mubr.bf16.gmra.mrb[28].mxu0 %v2678_v8  ;;  %2977 = vmatmul.mubr.bf16.gmra.mrb[28].mxu1 %v2694_v19 }
 0x278   : > { %v2858_v35 = vpop.f32.mrb[0].mxu0  ;;  %v2922_v20 = vpop.f32.mrb[0].mxu1 }
 0x279   : > { %v2859_v40 = vadd.f32 %v5103_v54, %v2858_v35  ;;  %v2923_v43 = vadd.f32 %v5103_v54, %v2922_v20  ;;  %v2860_v30 = vpop.f32.mrb[1].mxu0  ;;  %v2924_v4 = vpop.f32.mrb[1].mxu1 }
 0x27a   : > { %v2861_v27 = vpop.f32.mrb[2].mxu0  ;;  %v2925_v0 = vpop.f32.mrb[2].mxu1 }
 0x27b   : > { %3825 = vtanh.f32 %v2859_v40  ;;  %v2862_v16 = vadd.f32 %v5103_v54, %v2861_v27  ;;  %v2926_v18 = vadd.f32 %v5103_v54, %v2925_v0  ;;  %v2863_v58 = vpop.f32.mrb[3].mxu0  ;;  %v2927_v33 = vpop.f32.mrb[3].mxu1 }
 0x27c   : > { %3827 = vtanh.f32 %v2923_v43 }
 0x27d   : > { %3829 = vtanh.f32 %v2862_v16 }
 0x27e   : > { %3831 = vtanh.f32 %v2926_v18 }
 0x280   : > { %v2866_v11 = vpop.f32.mrb[4].mxu0  ;;  %v2930_v45 = vpop.f32.mrb[4].mxu1 }
 0x281   : > { %v2867_v32 = vadd.f32 %v5103_v54, %v2866_v11  ;;  %v2931_v7 = vadd.f32 %v5103_v54, %v2930_v45  ;;  %v2868_v6 = vpop.f32.mrb[5].mxu0  ;;  %v2932_v37 = vpop.f32.mrb[5].mxu1 }
 0x282   : > { %v2869_v49 = vpop.f32.mrb[6].mxu0  ;;  %v2933_v55 = vpop.f32.mrb[6].mxu1 }
 0x283   : > { %3833 = vtanh.f32 %v2867_v32  ;;  %v2870_v3 = vadd.f32 %v5103_v54, %v2869_v49  ;;  %v2934_v50 = vadd.f32 %v5103_v54, %v2933_v55  ;;  %v2871_v59 = vpop.f32.mrb[7].mxu0  ;;  %v2935_v46 = vpop.f32.mrb[7].mxu1 }
 0x284   : > { %3835 = vtanh.f32 %v2931_v7 }
 0x285   : > { %v3826_v63 = vpop.eup %3825  ;;  %3837 = vtanh.f32 %v2870_v3 }
 0x286   : > { %v3828_v5 = vpop.eup %3827  ;;  %3017 = vst [vmem:[%s4131_s12] sm:$0xff] %v3826_v63  ;;  %3839 = vtanh.f32 %v2934_v50 }
 0x287   : > { %v3830_v29 = vpop.eup %3829  ;;  %3033 = vst [vmem:[%s4131_s12 + $0x80] sm:$0xff] %v3828_v5 }
 0x288   : > { %v3832_v62 = vpop.eup %3831  ;;  %3018 = vst [vmem:[%s4131_s12 + $0x8] sm:$0xff] %v3830_v29  ;;  %v2874_v52 = vpop.f32.mrb[8].mxu0 }
 0x289   : > { %v2938_v25 = vpop.f32.mrb[8].mxu1  ;;  %3034 = vst [vmem:[%s4131_s12 + $0x88] sm:$0xff] %v3832_v62  ;;  %v2875_v15 = vadd.f32 %v5103_v54, %v2874_v52  ;;  %v2876_v47 = vpop.f32.mrb[9].mxu0 }
 0x28a   : > { %v2939_v41 = vadd.f32 %v5103_v54, %v2938_v25  ;;  %v2940_v23 = vpop.f32.mrb[9].mxu1  ;;  %v2877_v36 = vpop.f32.mrb[10].mxu0 }
 0x28b   : > { %v2941_v48 = vpop.f32.mrb[10].mxu1  ;;  %3841 = vtanh.f32 %v2875_v15  ;;  %v2878_v56 = vadd.f32 %v5103_v54, %v2877_v36  ;;  %v2879_v26 = vpop.f32.mrb[11].mxu0 }
 0x28c   : > { %v2942_v2 = vadd.f32 %v5103_v54, %v2941_v48  ;;  %v2943_v38 = vpop.f32.mrb[11].mxu1  ;;  %3843 = vtanh.f32 %v2939_v41 }
 0x28d   : > { %v3834_v10 = vpop.eup %3833  ;;  %3845 = vtanh.f32 %v2878_v56 }
 0x28e   : > { %v3836_v44 = vpop.eup %3835  ;;  %3019 = vst [vmem:[%s4131_s12 + $0x10] sm:$0xff] %v3834_v10  ;;  %3847 = vtanh.f32 %v2942_v2 }
 0x28f   : > { %v3838_v24 = vpop.eup %3837  ;;  %3035 = vst [vmem:[%s4131_s12 + $0x90] sm:$0xff] %v3836_v44 }
 0x290   : > { %v3840_v53 = vpop.eup %3839  ;;  %3020 = vst [vmem:[%s4131_s12 + $0x18] sm:$0xff] %v3838_v24  ;;  %v2882_v14 = vpop.f32.mrb[12].mxu0 }
 0x291   : > { %v2946_v12 = vpop.f32.mrb[12].mxu1  ;;  %3036 = vst [vmem:[%s4131_s12 + $0x98] sm:$0xff] %v3840_v53  ;;  %v2883_v34 = vadd.f32 %v5103_v54, %v2882_v14  ;;  %v2884_v22 = vpop.f32.mrb[13].mxu0 }
 0x292   : > { %v2947_v28 = vadd.f32 %v5103_v54, %v2946_v12  ;;  %v2948_v39 = vpop.f32.mrb[13].mxu1  ;;  %v2885_v42 = vpop.f32.mrb[14].mxu0 }
 0x293   : > { %v2949_v31 = vpop.f32.mrb[14].mxu1  ;;  %3849 = vtanh.f32 %v2883_v34  ;;  %v2886_v60 = vadd.f32 %v5103_v54, %v2885_v42  ;;  %v2887_v9 = vpop.f32.mrb[15].mxu0 }
 0x294   : > { %v2950_v57 = vadd.f32 %v5103_v54, %v2949_v31  ;;  %v2951_v13 = vpop.f32.mrb[15].mxu1  ;;  %3851 = vtanh.f32 %v2947_v28 }
 0x295   : > { %v3842_v17 = vpop.eup %3841  ;;  %3853 = vtanh.f32 %v2886_v60 }
 0x296   : > { %v3844_v61 = vpop.eup %3843  ;;  %3021 = vst [vmem:[%s4131_s12 + $0x20] sm:$0xff] %v3842_v17  ;;  %3855 = vtanh.f32 %v2950_v57 }
 0x297   : > { %v3846_v51 = vpop.eup %3845  ;;  %3037 = vst [vmem:[%s4131_s12 + $0xa0] sm:$0xff] %v3844_v61 }
 0x298   : > { %v3848_v21 = vpop.eup %3847  ;;  %3022 = vst [vmem:[%s4131_s12 + $0x28] sm:$0xff] %v3846_v51  ;;  %v2890_v1 = vpop.f32.mrb[16].mxu0 }
 0x299   : > { %v2954_v8 = vpop.f32.mrb[16].mxu1  ;;  %3038 = vst [vmem:[%s4131_s12 + $0xa8] sm:$0xff] %v3848_v21  ;;  %v2891_v19 = vadd.f32 %v5103_v54, %v2890_v1  ;;  %v2892_v20 = vpop.f32.mrb[17].mxu0 }
 0x29a   : > { %v2955_v35 = vadd.f32 %v5103_v54, %v2954_v8  ;;  %v2956_v40 = vpop.f32.mrb[17].mxu1  ;;  %v2893_v43 = vpop.f32.mrb[18].mxu0  ;;  %v3149_v20 = vld [vmem:[%s4131_s12] sm:$0xff] (%p4057_p9) }
 0x29b   : > { %v2957_v30 = vpop.f32.mrb[18].mxu1  ;;  %3857 = vtanh.f32 %v2891_v19  ;;  %v2894_v4 = vadd.f32 %v5103_v54, %v2893_v43  ;;  %v2895_v0 = vpop.f32.mrb[19].mxu0  ;;  %v3151_v40 = vld [vmem:[%s4131_s12 + $0x8] sm:$0xff] (%p4057_p9)  ;;  %v3153_v43 = vld [vmem:[%s4131_s12 + $0x10] sm:$0xff] (%p4057_p9)  ;;  %3150 = vst [vmem:[%s5185_s14] sm:$0xff] (%p4057_p9), %v3149_v20 }
 0x29c   : > { %v2958_v27 = vadd.f32 %v5103_v54, %v2957_v30  ;;  %v2959_v16 = vpop.f32.mrb[19].mxu1  ;;  %3859 = vtanh.f32 %v2955_v35  ;;  %v3155_v30 = vld [vmem:[%s4131_s12 + $0x18] sm:$0xff] (%p4057_p9)  ;;  %3152 = vst [vmem:[%s5185_s14 + $0x10] sm:$0xff] (%p4057_p9), %v3151_v40  ;;  %3154 = vst [vmem:[%s5185_s14 + $0x20] sm:$0xff] (%p4057_p9), %v3153_v43 }
 0x29d   : > { %v3850_v18 = vpop.eup %3849  ;;  %3861 = vtanh.f32 %v2894_v4  ;;  %v3157_v4 = vld [vmem:[%s4131_s12 + $0x20] sm:$0xff] (%p4057_p9)  ;;  %3156 = vst [vmem:[%s5185_s14 + $0x30] sm:$0xff] (%p4057_p9), %v3155_v30 }
 0x29e   : > { %v3852_v58 = vpop.eup %3851  ;;  %3023 = vst [vmem:[%s4131_s12 + $0x30] sm:$0xff] %v3850_v18  ;;  %3863 = vtanh.f32 %v2958_v27  ;;  %3158 = vst [vmem:[%s5185_s14 + $0x40] sm:$0xff] (%p4057_p9), %v3157_v4 }
 0x29f   : > { %v3854_v33 = vpop.eup %3853  ;;  %3039 = vst [vmem:[%s4131_s12 + $0xb0] sm:$0xff] %v3852_v58  ;;  %v3159_v27 = vld [vmem:[%s4131_s12 + $0x28] sm:$0xff] (%p4057_p9) }
 0x2a0   : > { %v3856_v11 = vpop.eup %3855  ;;  %3024 = vst [vmem:[%s4131_s12 + $0x38] sm:$0xff] %v3854_v33  ;;  %v2898_v45 = vpop.f32.mrb[20].mxu0  ;;  %3160 = vst [vmem:[%s5185_s14 + $0x50] sm:$0xff] (%p4057_p9), %v3159_v27 }
 0x2a1   : > { %v2962_v32 = vpop.f32.mrb[20].mxu1  ;;  %3040 = vst [vmem:[%s4131_s12 + $0xb8] sm:$0xff] %v3856_v11  ;;  %v2899_v7 = vadd.f32 %v5103_v54, %v2898_v45  ;;  %v2900_v37 = vpop.f32.mrb[21].mxu0 }
 0x2a2   : > { %v2963_v6 = vadd.f32 %v5103_v54, %v2962_v32  ;;  %v2964_v49 = vpop.f32.mrb[21].mxu1  ;;  %v2901_v55 = vpop.f32.mrb[22].mxu0  ;;  %v3181_v37 = vld [vmem:[%s4131_s12 + $0x80] sm:$0xff] (%p4057_p9) }
 0x2a3   : > { %v2965_v3 = vpop.f32.mrb[22].mxu1  ;;  %3865 = vtanh.f32 %v2899_v7  ;;  %v2902_v50 = vadd.f32 %v5103_v54, %v2901_v55  ;;  %v2903_v46 = vpop.f32.mrb[23].mxu0  ;;  %v3183_v49 = vld [vmem:[%s4131_s12 + $0x88] sm:$0xff] (%p4057_p9)  ;;  %3182 = vst [vmem:[%s5185_s14 + $0x100] sm:$0xff] (%p4057_p9), %v3181_v37  ;;  %v3185_v55 = vld [vmem:[%s4131_s12 + $0x90] sm:$0xff] (%p4057_p9) }
 0x2a4   : > { %v2966_v59 = vadd.f32 %v5103_v54, %v2965_v3  ;;  %v2967_v63 = vpop.f32.mrb[23].mxu1  ;;  %3867 = vtanh.f32 %v2963_v6  ;;  %3184 = vst [vmem:[%s5185_s14 + $0x110] sm:$0xff] (%p4057_p9), %v3183_v49  ;;  %v3187_v3 = vld [vmem:[%s4131_s12 + $0x98] sm:$0xff] (%p4057_p9)  ;;  %3186 = vst [vmem:[%s5185_s14 + $0x120] sm:$0xff] (%p4057_p9), %v3185_v55 }
 0x2a5   : > { %v3858_v5 = vpop.eup %3857  ;;  %3869 = vtanh.f32 %v2902_v50  ;;  %v3161_v0 = vld [vmem:[%s4131_s12 + $0x30] sm:$0xff] (%p4057_p9)  ;;  %v3189_v50 = vld [vmem:[%s4131_s12 + $0xa0] sm:$0xff] (%p4057_p9)  ;;  %3188 = vst [vmem:[%s5185_s14 + $0x130] sm:$0xff] (%p4057_p9), %v3187_v3 }
 0x2a6   : > { %v3860_v29 = vpop.eup %3859  ;;  %3025 = vst [vmem:[%s4131_s12 + $0x40] sm:$0xff] %v3858_v5  ;;  %3871 = vtanh.f32 %v2966_v59  ;;  %3162 = vst [vmem:[%s5185_s14 + $0x60] sm:$0xff] (%p4057_p9), %v3161_v0  ;;  %v3191_v59 = vld [vmem:[%s4131_s12 + $0xa8] sm:$0xff] (%p4057_p9)  ;;  %v3193_v46 = vld [vmem:[%s4131_s12 + $0xb0] sm:$0xff] (%p4057_p9) }
 0x2a7   : > { %v3862_v62 = vpop.eup %3861  ;;  %3041 = vst [vmem:[%s4131_s12 + $0xc0] sm:$0xff] %v3860_v29  ;;  %v3163_v16 = vld [vmem:[%s4131_s12 + $0x38] sm:$0xff] (%p4057_p9)  ;;  %3190 = vst [vmem:[%s5185_s14 + $0x140] sm:$0xff] (%p4057_p9), %v3189_v50 }
 0x2a8   : > { %v3864_v52 = vpop.eup %3863  ;;  %3026 = vst [vmem:[%s4131_s12 + $0x48] sm:$0xff] %v3862_v62  ;;  %v2906_v25 = vpop.f32.mrb[24].mxu0  ;;  %3164 = vst [vmem:[%s5185_s14 + $0x70] sm:$0xff] (%p4057_p9), %v3163_v16  ;;  %v3195_v63 = vld [vmem:[%s4131_s12 + $0xb8] sm:$0xff] (%p4057_p9) }
 0x2a9   : > { %v2970_v15 = vpop.f32.mrb[24].mxu1  ;;  %3042 = vst [vmem:[%s4131_s12 + $0xc8] sm:$0xff] %v3864_v52  ;;  %v2907_v41 = vadd.f32 %v5103_v54, %v2906_v25  ;;  %v2908_v23 = vpop.f32.mrb[25].mxu0  ;;  %3192 = vst [vmem:[%s5185_s14 + $0x150] sm:$0xff] (%p4057_p9), %v3191_v59 }
 0x2aa   : > { %v2971_v47 = vadd.f32 %v5103_v54, %v2970_v15  ;;  %v2972_v36 = vpop.f32.mrb[25].mxu1  ;;  %v2909_v48 = vpop.f32.mrb[26].mxu0  ;;  %3194 = vst [vmem:[%s5185_s14 + $0x160] sm:$0xff] (%p4057_p9), %v3193_v46  ;;  %3196 = vst [vmem:[%s5185_s14 + $0x170] sm:$0xff] (%p4057_p9), %v3195_v63 }
 0x2ab   : > { %v2973_v56 = vpop.f32.mrb[26].mxu1  ;;  %3873 = vtanh.f32 %v2907_v41  ;;  %v2910_v2 = vadd.f32 %v5103_v54, %v2909_v48  ;;  %v2911_v38 = vpop.f32.mrb[27].mxu0 }
 0x2ac   : > { %v2974_v26 = vadd.f32 %v5103_v54, %v2973_v56  ;;  %v2975_v10 = vpop.f32.mrb[27].mxu1  ;;  %3875 = vtanh.f32 %v2971_v47 }
 0x2ad   : > { %v3866_v44 = vpop.eup %3865  ;;  %3877 = vtanh.f32 %v2910_v2  ;;  %v3165_v18 = vld [vmem:[%s4131_s12 + $0x40] sm:$0xff] (%p4057_p9) }
 0x2ae   : > { %v3868_v24 = vpop.eup %3867  ;;  %3027 = vst [vmem:[%s4131_s12 + $0x50] sm:$0xff] %v3866_v44  ;;  %3879 = vtanh.f32 %v2974_v26  ;;  %3166 = vst [vmem:[%s5185_s14 + $0x80] sm:$0xff] (%p4057_p9), %v3165_v18  ;;  %v3197_v5 = vld [vmem:[%s4131_s12 + $0xc0] sm:$0xff] (%p4057_p9) }
 0x2af   : > { %v3870_v53 = vpop.eup %3869  ;;  %3043 = vst [vmem:[%s4131_s12 + $0xd0] sm:$0xff] %v3868_v24  ;;  %v3167_v58 = vld [vmem:[%s4131_s12 + $0x48] sm:$0xff] (%p4057_p9)  ;;  %3198 = vst [vmem:[%s5185_s14 + $0x180] sm:$0xff] (%p4057_p9), %v3197_v5 }
 0x2b0   : > { %v3872_v14 = vpop.eup %3871  ;;  %3028 = vst [vmem:[%s4131_s12 + $0x58] sm:$0xff] %v3870_v53  ;;  %v2914_v12 = vpop.f32.mrb[28].mxu0  ;;  %3168 = vst [vmem:[%s5185_s14 + $0x90] sm:$0xff] (%p4057_p9), %v3167_v58  ;;  %v3199_v29 = vld [vmem:[%s4131_s12 + $0xc8] sm:$0xff] (%p4057_p9) }
 0x2b1   : > { %v2978_v34 = vpop.f32.mrb[28].mxu1  ;;  %3044 = vst [vmem:[%s4131_s12 + $0xd8] sm:$0xff] %v3872_v14  ;;  %v2915_v28 = vadd.f32 %v5103_v54, %v2914_v12  ;;  %v2916_v39 = vpop.f32.mrb[29].mxu0  ;;  %3200 = vst [vmem:[%s5185_s14 + $0x190] sm:$0xff] (%p4057_p9), %v3199_v29 }
 0x2b2   : > { %v2979_v22 = vadd.f32 %v5103_v54, %v2978_v34  ;;  %v2980_v42 = vpop.f32.mrb[29].mxu1  ;;  %v2917_v31 = vpop.f32.mrb[30].mxu0 }
 0x2b3   : > { %v2981_v60 = vpop.f32.mrb[30].mxu1  ;;  %3881 = vtanh.f32 %v2915_v28  ;;  %v2918_v57 = vadd.f32 %v5103_v54, %v2917_v31  ;;  %v2919_v13 = vpop.f32.mrb[31].mxu0 }
 0x2b4   : > { %v2982_v9 = vadd.f32 %v5103_v54, %v2981_v60  ;;  %v2983_v17 = vpop.f32.mrb[31].mxu1  ;;  %3883 = vtanh.f32 %v2979_v22 }
 0x2b5   : > { %v3874_v61 = vpop.eup %3873  ;;  %3885 = vtanh.f32 %v2918_v57  ;;  %v3169_v33 = vld [vmem:[%s4131_s12 + $0x50] sm:$0xff] (%p4057_p9) }
 0x2b6   : > { %v3876_v51 = vpop.eup %3875  ;;  %3029 = vst [vmem:[%s4131_s12 + $0x60] sm:$0xff] %v3874_v61  ;;  %3887 = vtanh.f32 %v2982_v9  ;;  %3170 = vst [vmem:[%s5185_s14 + $0xa0] sm:$0xff] (%p4057_p9), %v3169_v33  ;;  %v3201_v62 = vld [vmem:[%s4131_s12 + $0xd0] sm:$0xff] (%p4057_p9) }
 0x2b7   : > { %v3878_v21 = vpop.eup %3877  ;;  %3045 = vst [vmem:[%s4131_s12 + $0xe0] sm:$0xff] %v3876_v51  ;;  %v3171_v11 = vld [vmem:[%s4131_s12 + $0x58] sm:$0xff] (%p4057_p9)  ;;  %3202 = vst [vmem:[%s5185_s14 + $0x1a0] sm:$0xff] (%p4057_p9), %v3201_v62 }
 0x2b8   : > { %v3880_v1 = vpop.eup %3879  ;;  %3030 = vst [vmem:[%s4131_s12 + $0x68] sm:$0xff] %v3878_v21  ;;  %3172 = vst [vmem:[%s5185_s14 + $0xb0] sm:$0xff] (%p4057_p9), %v3171_v11  ;;  %v3203_v52 = vld [vmem:[%s4131_s12 + $0xd8] sm:$0xff] (%p4057_p9) }
 0x2b9   : > { %3046 = vst [vmem:[%s4131_s12 + $0xe8] sm:$0xff] %v3880_v1  ;;  %3204 = vst [vmem:[%s5185_s14 + $0x1b0] sm:$0xff] (%p4057_p9), %v3203_v52 }
 0x2bb   : > { %3055 = sbr.rel (!%p4057_p9) target bundleno = 714 (0x2ca), region = 81 }
 0x2bd   : > { %v3882_v8 = vpop.eup %3881  ;;  %v3173_v45 = vld [vmem:[%s4131_s12 + $0x60] sm:$0xff] (%p4057_p9) }
 0x2be   : > { %v3884_v19 = vpop.eup %3883  ;;  %3031 = vst [vmem:[%s4131_s12 + $0x70] sm:$0xff] %v3882_v8  ;;  %3174 = vst [vmem:[%s5185_s14 + $0xc0] sm:$0xff] (%p4057_p9), %v3173_v45  ;;  %v3205_v25 = vld [vmem:[%s4131_s12 + $0xe0] sm:$0xff] (%p4057_p9) }
 0x2bf   : > { %v3886_v54 = vpop.eup %3885  ;;  %3047 = vst [vmem:[%s4131_s12 + $0xf0] sm:$0xff] %v3884_v19  ;;  %v3175_v32 = vld [vmem:[%s4131_s12 + $0x68] sm:$0xff] (%p4057_p9)  ;;  %3206 = vst [vmem:[%s5185_s14 + $0x1c0] sm:$0xff] (%p4057_p9), %v3205_v25 }
 0x2c0   : > { %v3888_v35 = vpop.eup %3887  ;;  %3032 = vst [vmem:[%s4131_s12 + $0x78] sm:$0xff] %v3886_v54  ;;  %3176 = vst [vmem:[%s5185_s14 + $0xd0] sm:$0xff] (%p4057_p9), %v3175_v32  ;;  %v3207_v15 = vld [vmem:[%s4131_s12 + $0xe8] sm:$0xff] (%p4057_p9) }
 0x2c1   : > { %3048 = vst [vmem:[%s4131_s12 + $0xf8] sm:$0xff] %v3888_v35  ;;  %3208 = vst [vmem:[%s5185_s14 + $0x1d0] sm:$0xff] (%p4057_p9), %v3207_v15 }
 0x2c5   : > { %v3177_v7 = vld [vmem:[%s4131_s12 + $0x70] sm:$0xff] }
 0x2c6   : > { %3178 = vst [vmem:[%s5185_s14 + $0xe0] sm:$0xff] %v3177_v7  ;;  %v3209_v41 = vld [vmem:[%s4131_s12 + $0xf0] sm:$0xff] }
 0x2c7   : > { %v3179_v6 = vld [vmem:[%s4131_s12 + $0x78] sm:$0xff]  ;;  %3210 = vst [vmem:[%s5185_s14 + $0x1e0] sm:$0xff] %v3209_v41 }
 0x2c8   : > { %3180 = vst [vmem:[%s5185_s14 + $0xf0] sm:$0xff] %v3179_v6  ;;  %v3211_v47 = vld [vmem:[%s4131_s12 + $0xf8] sm:$0xff] }
 0x2c9   : > { %3212 = vst [vmem:[%s5185_s14 + $0x1f0] sm:$0xff] %v3211_v47 }
 0x2ca PF: > { %s13_s20 = sadd.s32 1, %s3959_s20   ;;  %s5286_s12 = smov %s3931_s13 }
 0x2cb   : > { %p10_p3 = scmp.ge.s32.totalorder %s13_s20, 6   ;;  %s5287_s13 = smov %s4062_s4 }
 0x2cc   : > { %s5288_s14 = smov %s3939_s15  ;;  %s5289_s15 = smov %s4051_s27 }
 0x2cd   : > { %s5290_s16 = smov %s3951_s18  ;;  %s5291_s17 = smov %s3955_s19 }
 0x2ce   : > { %s5292_s18 = smov %s5295_s22  ;;  %s5293_s19 = smov %s5299_s23 }
 0x2cf   :  { %12 = sbr.rel (!%p10_p3) target bundleno = 5 (0x5), region = 158 }

</bundles_post_ra>
